<compile_context>
chip_gen: v7x
topology: tpu7x:2x2x1
jax: 0.10.0
libtpu: 0.0.40
codegen_flags: <defaults>
</compile_context>

<pallas_src>
import functools

import jax
import jax.numpy as jnp
from jax.experimental import pallas as pl
from jax.experimental.pallas import tpu as pltpu

H_LAYER = 600          # hidden size (matches module-level h_layer)
BOTTLENECK = 300       # latent size (matches module-level bottleneck_layer)
DROPOUT_P = 0.5

# murmur3-style mixing constants, pre-wrapped to the signed int32 range.
_GOLD = -1640531527    # 0x9E3779B9
_MIX0 = 0x7FEB352D
_MIX1 = -2048144789    # 0x85EBCA6B
_MIX2 = -1028477387    # 0xC2B2AE35


def _round_up(n, m):
    return ((n + m - 1) // m) * m


def _lsr32(v, n):
    """Logical right shift for int32 values (arith shift + mask of sign bits)."""
    return (v >> n) & ((1 << (32 - n)) - 1)


def encoder_kernel(seed_ref,                                        # scalar prefetch (SMEM)
                   x_ref, w1_ref, b1_ref, w2_ref, b2_ref, eps_ref,  # inputs
                   z_ref, mu_ref, lv_ref,                           # outputs
                   acc_ref, ssq_ref,                                # VMEM scratch
                   *, apply_dropout, keep_threshold, inv_keep, tb, tk):
    b = pl.program_id(0)
    k = pl.program_id(1)
    nk = pl.num_programs(1)

    @pl.when(k == 0)
    def _init():
        acc_ref[...] = jnp.zeros_like(acc_ref)
        ssq_ref[...] = jnp.zeros_like(ssq_ref)

    x = x_ref[...]                                   # (TB, TK) bf16
    xf = x.astype(jnp.float32)
    # Accumulate ||x||^2 per row; the 1/||x|| normalize scale is a per-row scalar,
    # so it commutes with the matmul and is applied once at the last K step.
    ssq_ref[...] += jnp.sum(xf * xf, axis=-1, keepdims=True)

    if apply_dropout:
        # Portable counter-based hash over *global* (row, col) indices: the mask
        # is reproducible across any (TB, TK) tiling / TensorCore split.  Raw
        # bits are compared against an int32 threshold; the 1/keep rescale is
        # folded into the normalize scale below (no f32 math on the wide tensor).
        # TODO(synk): pltpu.prng_random_bits is cheaper on real TPU but has no
        # interpret/CPU lowering, so it cannot be used in this sandbox.
        row = jax.lax.broadcasted_iota(jnp.int32, x.shape, 0) + b * tb
        col = jax.lax.broadcasted_iota(jnp.int32, x.shape, 1) + k * tk
        h32 = seed_ref[0] + row * _GOLD + col * _MIX0
        h32 = (h32 ^ _lsr32(h32, 16)) * _MIX1
        h32 = (h32 ^ _lsr32(h32, 13)) * _MIX2
        h32 = h32 ^ _lsr32(h32, 16)
        keep = (h32 & 0x7FFFFFFF) < keep_threshold
        x_in = jnp.where(keep, x, 0)
    else:
        x_in = x

    # bf16 operands, f32 MXU accumulation into the resident VMEM accumulator.
    acc_ref[...] += jnp.dot(x_in, w1_ref[...], preferred_element_type=jnp.float32)

    @pl.when(k == nk - 1)
    def _finish():
        # F.normalize scale (and 1/keep) applied once; rsqrt runs on the EUP slot.
        # All-zero padded batch rows give rsqrt(1e-24) * 0 = 0, i.e. finite
        # outputs that the wrapper slices away.
        scale = jax.lax.rsqrt(jnp.maximum(ssq_ref[...], 1e-24))
        if inv_keep != 1.0:
            scale = scale * jnp.float32(inv_keep)
        h = jnp.tanh(acc_ref[...] * scale + b1_ref[...])

        # Fused mu|logvar head: one (H_pad, 2*Z_pad) matmul split on a 128 lane
        # boundary.
        ml = jnp.dot(h.astype(jnp.bfloat16), w2_ref[...],
                     preferred_element_type=jnp.float32) + b2_ref[...]
        zp = mu_ref.shape[-1]
        mu = ml[:, :zp]
        lv = ml[:, zp:]
        mu_ref[...] = mu
        lv_ref[...] = lv
        # reparameterize: z = mu + eps * exp(0.5 * logvar)
        z_ref[...] = mu + eps_ref[...] * jnp.exp(0.5 * lv)


def prepare_encoder_params(w1, b1, w2m, b2m, w2v, b2v, *, block_k=512):
    """Pad/convert the weights ONCE (not per forward call).

    Weights are [in_features, out_features]; D is padded to a multiple of the
    K tile, H/Z to multiples of 128 (lane-dense MXU tiles and unmasked stores).
    """
    D, H = w1.shape
    Z = w2m.shape[1]
    TK = min(_round_up(block_k, 128), _round_up(D, 128))
    D_pad = _round_up(D, TK)
    H_pad = _round_up(H, 128)
    Z_pad = _round_up(Z, 128)
    bf16, f32 = jnp.bfloat16, jnp.float32

    # TODO(synk): on v7x, w1 could be stored as fp8 (e4m3 + per-channel scale)
    # to halve its DMA/VMEM footprint again; kept bf16 for v5e/v6e portability.
    w1_p = jnp.zeros((D_pad, H_pad), bf16).at[:D, :H].set(w1.astype(bf16))
    b1_p = jnp.zeros((1, H_pad), f32).at[:, :H].set(b1.astype(f32).reshape(1, -1))

    # Fused mu|logvar weight: cols [0:Z] = mu head, [Z_pad:Z_pad+Z] = logvar head.
    w2_p = jnp.zeros((H_pad, 2 * Z_pad), bf16)
    w2_p = w2_p.at[:H, :Z].set(w2m.astype(bf16))
    w2_p = w2_p.at[:H, Z_pad:Z_pad + Z].set(w2v.astype(bf16))
    b2_p = jnp.zeros((1, 2 * Z_pad), f32)
    b2_p = b2_p.at[:, :Z].set(b2m.astype(f32).reshape(1, -1))
    b2_p = b2_p.at[:, Z_pad:Z_pad + Z].set(b2v.astype(f32).reshape(1, -1))

    return dict(w1=w1_p, b1=b1_p, w2=w2_p, b2=b2_p,
                d=D, h=H, z=Z, d_pad=D_pad, h_pad=H_pad, z_pad=Z_pad, tk=TK)


def encoder_forward(params, x, eps, *, seed=0, dropout_p=DROPOUT_P, training=True,
                    block_b=512, vmem_limit_bytes=None):
    """Fused Encoder forward. Returns (z, mu, logvar) at logical shapes.

    Tuning notes (per review): on v5e/v6e (128 MiB VMEM) block_b=512-1024 and
    vmem_limit_bytes up to ~96-112 MiB; on v7x (64 MiB/TC) keep block_b<=256 and
    vmem_limit_bytes <= ~56 MiB.  With K-tiling the per-step footprint is small,
    so the defaults below are safe everywhere.
    """
    B, D = x.shape
    assert D == params["d"], "input width does not match prepared weights"
    D_pad, H_pad, Z_pad = params["d_pad"], params["h_pad"], params["z_pad"]
    TK, Z = params["tk"], params["z"]

    TB = min(_round_up(block_b, 8), _round_up(B, 8))
    # Keep >= 2 batch-grid steps when the batch allows it so the "parallel" axis
    # can actually shard across v7x's 2 TensorCores.
    while TB > 8 and _round_up(B, TB) // TB < 2:
        TB = _round_up(TB // 2, 8)
    B_pad = _round_up(B, TB)
    grid = (B_pad // TB, D_pad // TK)     # (batch "parallel", K reduction last)

    f32, bf16 = jnp.float32, jnp.bfloat16

    # x streamed as bf16 (halves the dominant input DMA); pad only when needed.
    if (B_pad, D_pad) == (B, D):
        x_p = x.astype(bf16)
    else:
        x_p = jnp.zeros((B_pad, D_pad), bf16).at[:B, :D].set(x.astype(bf16))
    # TODO(synk): eps could be generated on-chip with pltpu.stateful_normal on
    # real TPU (no interpret/CPU lowering), removing this input stream entirely.
    if (B_pad, Z_pad) == eps.shape:
        eps_p = eps.astype(f32)
    else:
        eps_p = jnp.zeros((B_pad, Z_pad), f32).at[:B, :Z].set(eps.astype(f32))

    apply_dropout = bool(training) and float(dropout_p) > 0.0
    keep_prob = 1.0 - float(dropout_p) if apply_dropout else 1.0
    keep_threshold = min(int(keep_prob * 2147483648.0), 2147483647)
    inv_keep = 1.0 / keep_prob

    seed_arr = jnp.array([seed], jnp.int32)

    kernel = functools.partial(
        encoder_kernel,
        apply_dropout=apply_dropout,      # inference traces a no-dropout variant
        keep_threshold=keep_threshold,
        inv_keep=inv_keep, tb=TB, tk=TK)

    x_spec = pl.BlockSpec((TB, TK), lambda b, k, *_: (b, k))
    w1_spec = pl.BlockSpec((TK, H_pad), lambda b, k, *_: (k, 0))
    # b1/w2/b2 blocks never change (~2 MB total after K-tiling); on VMEM-tight
    # v7x configs they can additionally be single-buffered with
    # pipeline_mode=pl.Buffered(1).
    const = lambda shape: pl.BlockSpec(shape, lambda b, k, *_: (0, 0))
    row_spec = lambda cols: pl.BlockSpec((TB, cols), lambda b, k, *_: (b, 0))

    # mu/logvar could be emitted as bf16 to cut writeback ~1/3 if the downstream
    # KL loss tolerates it; kept f32 to match the PyTorch module.
    z_p, mu_p, lv_p = pl.pallas_call(
        kernel,
        out_shape=(
            jax.ShapeDtypeStruct((B_pad, Z_pad), f32),   # z
            jax.ShapeDtypeStruct((B_pad, Z_pad), f32),   # mu
            jax.ShapeDtypeStruct((B_pad, Z_pad), f32),   # logvar
        ),
        grid_spec=pltpu.PrefetchScalarGridSpec(
            num_scalar_prefetch=1,                       # dropout/mask seed -> SMEM
            grid=grid,
            in_specs=[
                x_spec,                       # x   (batch x K tiled, bf16)
                w1_spec,                      # w1  (K tiled)
                const((1, H_pad)),            # b1
                const((H_pad, 2 * Z_pad)),    # w2 fused mu|logvar
                const((1, 2 * Z_pad)),        # b2 fused
                row_spec(Z_pad),              # eps (batch tiled, constant over K)
            ],
            out_specs=[row_spec(Z_pad) for _ in range(3)],
            scratch_shapes=[
                pltpu.VMEM((TB, H_pad), f32),   # pre-activation accumulator
                pltpu.VMEM((TB, 1), f32),       # per-row sum-of-squares
            ],
        ),
        compiler_params=pltpu.CompilerParams(
            dimension_semantics=("parallel", "arbitrary"),
            vmem_limit_bytes=vmem_limit_bytes,
        ),
    )(seed_arr, x_p, params["w1"], params["b1"], params["w2"], params["b2"], eps_p)

    return z_p[:B, :Z], mu_p[:B, :Z], lv_p[:B, :Z]


def init_linear(key, fan_in, fan_out):
    # PyTorch nn.Linear default init: U(-1/sqrt(fan_in), 1/sqrt(fan_in)).
    kw, kb = jax.random.split(key)
    bound = 1.0 / jnp.sqrt(jnp.float32(fan_in))
    w = jax.random.uniform(kw, (fan_in, fan_out), jnp.float32, -bound, bound)
    b = jax.random.uniform(kb, (1, fan_out), jnp.float32, -bound, bound)
    return w, b


if __name__ == "__main__":
    key = jax.random.PRNGKey(0)
    k_x, k_eps, k1, k2, k3 = jax.random.split(key, 5)

    B = 24          # small demo batch; block_b=8 -> 3 batch tiles (exercises the grid)
    X_LAYER = 200   # non-multiple-of-128 input width (exercises lane padding)

    x = jax.random.normal(k_x, (B, X_LAYER), jnp.float32)
    eps = jax.random.normal(k_eps, (B, BOTTLENECK), jnp.float32)  # randn_like(std)

    w1, b1 = init_linear(k1, X_LAYER, H_LAYER)
    w2m, b2m = init_linear(k2, H_LAYER, BOTTLENECK)
    w2v, b2v = init_linear(k3, H_LAYER, BOTTLENECK)

    # Pad / convert the weights ONCE; block_k=128 -> 2 K-tiles for D_pad=256.
    params = prepare_encoder_params(w1, b1, w2m, b2m, w2v, b2v, block_k=128)

    # ---- run 1: dropout disabled -> deterministic check against a pure-JAX reference
    z0, mu0, lv0 = encoder_forward(params, x, eps, seed=0, dropout_p=DROPOUT_P,
                                   training=False, block_b=8)
    jax.block_until_ready((z0, mu0, lv0))

    bf16 = jnp.bfloat16
    xn = x / jnp.maximum(jnp.linalg.norm(x, axis=-1, keepdims=True), 1e-12)
    h_r = jnp.tanh(jnp.dot(xn.astype(bf16), w1.astype(bf16),
                           preferred_element_type=jnp.float32) + b1)
    mu_r = jnp.dot(h_r.astype(bf16), w2m.astype(bf16),
                   preferred_element_type=jnp.float32) + b2m
    lv_r = jnp.dot(h_r.astype(bf16), w2v.astype(bf16),
                   preferred_element_type=jnp.float32) + b2v
    z_r = mu_r + eps * jnp.exp(0.5 * lv_r)

    assert mu0.shape == (B, BOTTLENECK) and z0.shape == (B, BOTTLENECK)
    assert jnp.allclose(mu0, mu_r, atol=1e-2, rtol=1e-2), "mu mismatch"
    assert jnp.allclose(lv0, lv_r, atol=1e-2, rtol=1e-2), "logvar mismatch"
    assert jnp.allclose(z0, z_r, atol=1e-2, rtol=1e-2), "z mismatch"

    # ---- run 2: training path with in-kernel hashed dropout (p=0.5)
    z1, mu1, lv1 = encoder_forward(params, x, eps, seed=1234, dropout_p=DROPOUT_P,
                                   training=True, block_b=8)
    jax.block_until_ready((z1, mu1, lv1))
    assert bool(jnp.all(jnp.isfinite(z1))) and bool(jnp.all(jnp.isfinite(mu1)))
    assert bool(jnp.all(jnp.isfinite(lv1)))
    assert not bool(jnp.allclose(mu1, mu0, atol=1e-4)), "dropout had no visible effect"

    print("KERNEL_OK")
</pallas_src>

<mosaic_0001>
module attributes {stable_mosaic.version = 11 : i64} {
  func.func @encoder_kernel(%arg0: i32, %arg1: i32, %arg2: memref<1xi32, #tpu.memory_space<smem>>, %arg3: memref<8x128xbf16, #tpu.memory_space<vmem>>, %arg4: memref<128x640xbf16, #tpu.memory_space<vmem>>, %arg5: memref<1x640xf32, #tpu.memory_space<vmem>>, %arg6: memref<640x768xbf16, #tpu.memory_space<vmem>>, %arg7: memref<1x768xf32, #tpu.memory_space<vmem>>, %arg8: memref<8x384xf32, #tpu.memory_space<vmem>>, %arg9: memref<8x384xf32, #tpu.memory_space<vmem>>, %arg10: memref<8x384xf32, #tpu.memory_space<vmem>>, %arg11: memref<8x384xf32, #tpu.memory_space<vmem>>, %arg12: memref<8x640xf32, #tpu.memory_space<vmem>>, %arg13: memref<8x1xf32, #tpu.memory_space<vmem>>) attributes {dimension_semantics = [#tpu.dimension_semantics<parallel>, #tpu.dimension_semantics<arbitrary>], iteration_bounds = array<i64: 3, 2>, scalar_prefetch = 1 : i64, scratch_operands = 2 : i64, tpu.core_type = #tpu.core_type<tc>, window_params = [{transform_indices = @transform_0, window_bounds = array<i64: 8, 128>}, {transform_indices = @transform_1, window_bounds = array<i64: 128, 640>}, {pipeline_mode = #tpu.pipeline_mode<synchronous>, transform_indices = @transform_2, window_bounds = array<i64: 1, 640>}, {pipeline_mode = #tpu.pipeline_mode<synchronous>, transform_indices = @transform_3, window_bounds = array<i64: 640, 768>}, {pipeline_mode = #tpu.pipeline_mode<synchronous>, transform_indices = @transform_4, window_bounds = array<i64: 1, 768>}, {transform_indices = @transform_5, window_bounds = array<i64: 8, 384>}, {transform_indices = @transform_6, window_bounds = array<i64: 8, 384>}, {transform_indices = @transform_7, window_bounds = array<i64: 8, 384>}, {transform_indices = @transform_8, window_bounds = array<i64: 8, 384>}]} {
    %c0_i32 = arith.constant 0 : i32
    %0 = arith.cmpi eq, %arg1, %c0_i32 : i32
    %1 = arith.extui %0 : i1 to i32
    %c0_i32_0 = arith.constant 0 : i32
    %2 = arith.cmpi ne, %1, %c0_i32_0 : i32
    scf.if %2 {
      %cst_14 = arith.constant 0.000000e+00 : f32
      %19 = vector.broadcast %cst_14 : f32 to vector<8x640xf32>
      %c0_15 = arith.constant 0 : index
      %c0_16 = arith.constant 0 : index
      %20 = vector.load %arg12[%c0_15, %c0_16] : memref<8x640xf32, #tpu.memory_space<vmem>>, vector<8x640xf32>
      tpu.vector_store %arg12[%c0_15, %c0_16], %19 {strides = array<i32>} : memref<8x640xf32, #tpu.memory_space<vmem>>, vector<8x640xf32>,
      %cst_17 = arith.constant 0.000000e+00 : f32
      %21 = vector.broadcast %cst_17 : f32 to vector<8x1xf32>
      %c0_18 = arith.constant 0 : index
      %c0_19 = arith.constant 0 : index
      %22 = vector.load %arg13[%c0_18, %c0_19] : memref<8x1xf32, #tpu.memory_space<vmem>>, vector<8x1xf32>
      tpu.vector_store %arg13[%c0_18, %c0_19], %21 {strides = array<i32>} : memref<8x1xf32, #tpu.memory_space<vmem>>, vector<8x1xf32>,
    } else {
    }
    %c0 = arith.constant 0 : index
    %c0_1 = arith.constant 0 : index
    %3 = vector.load %arg3[%c0, %c0_1] : memref<8x128xbf16, #tpu.memory_space<vmem>>, vector<8x128xbf16>
    %4 = arith.extf %3 : vector<8x128xbf16> to vector<8x128xf32>
    %c0_2 = arith.constant 0 : index
    %c0_3 = arith.constant 0 : index
    %5 = vector.load %arg13[%c0_2, %c0_3] : memref<8x1xf32, #tpu.memory_space<vmem>>, vector<8x1xf32>
    %6 = arith.mulf %4, %4 : vector<8x128xf32>
    %cst = arith.constant dense<0.000000e+00> : vector<8xf32>
    %7 = vector.multi_reduction <add>, %6, %cst [1] : vector<8x128xf32> to vector<8xf32>
    %8 = vector.shape_cast %7 : vector<8xf32> to vector<8x1xf32>
    %9 = arith.addf %5, %8 : vector<8x1xf32>
    %c0_4 = arith.constant 0 : index
    %c0_5 = arith.constant 0 : index
    %10 = vector.load %arg13[%c0_4, %c0_5] : memref<8x1xf32, #tpu.memory_space<vmem>>, vector<8x1xf32>
    tpu.vector_store %arg13[%c0_4, %c0_5], %9 {strides = array<i32>} : memref<8x1xf32, #tpu.memory_space<vmem>>, vector<8x1xf32>,
    %c0_6 = arith.constant 0 : index
    %c0_7 = arith.constant 0 : index
    %11 = vector.load %arg12[%c0_6, %c0_7] : memref<8x640xf32, #tpu.memory_space<vmem>>, vector<8x640xf32>
    %c0_8 = arith.constant 0 : index
    %c0_9 = arith.constant 0 : index
    %12 = vector.load %arg4[%c0_8, %c0_9] : memref<128x640xbf16, #tpu.memory_space<vmem>>, vector<128x640xbf16>
    %cst_10 = arith.constant dense<0.000000e+00> : vector<8x640xf32>
    %13 = tpu.matmul %3, %12, %cst_10 {dimension_numbers = #tpu.dot_dimension_numbers<[1], [0], [0], [1], [0, 0, 1, 1], [], []>} : vector<8x128xbf16>, vector<128x640xbf16>, vector<8x640xf32> -> vector<8x640xf32>
    %14 = arith.addf %11, %13 : vector<8x640xf32>
    %c0_11 = arith.constant 0 : index
    %c0_12 = arith.constant 0 : index
    %15 = vector.load %arg12[%c0_11, %c0_12] : memref<8x640xf32, #tpu.memory_space<vmem>>, vector<8x640xf32>
    tpu.vector_store %arg12[%c0_11, %c0_12], %14 {strides = array<i32>} : memref<8x640xf32, #tpu.memory_space<vmem>>, vector<8x640xf32>,
    %c1_i32 = arith.constant 1 : i32
    %16 = arith.cmpi eq, %arg1, %c1_i32 : i32
    %17 = arith.extui %16 : i1 to i32
    %c0_i32_13 = arith.constant 0 : i32
    %18 = arith.cmpi ne, %17, %c0_i32_13 : i32
    scf.if %18 {
      %c0_14 = arith.constant 0 : index
      %c0_15 = arith.constant 0 : index
      %19 = vector.load %arg13[%c0_14, %c0_15] : memref<8x1xf32, #tpu.memory_space<vmem>>, vector<8x1xf32>
      %cst_16 = arith.constant 1.000000e-24 : f32
      %20 = vector.broadcast %cst_16 : f32 to vector<8x1xf32>
      %21 = arith.maximumf %19, %20 : vector<8x1xf32>
      %22 = math.rsqrt %21 : vector<8x1xf32>
      %c0_17 = arith.constant 0 : index
      %c0_18 = arith.constant 0 : index
      %23 = vector.load %arg12[%c0_17, %c0_18] : memref<8x640xf32, #tpu.memory_space<vmem>>, vector<8x640xf32>
      %24 = vector.broadcast %22 : vector<8x1xf32> to vector<8x640xf32>
      %25 = arith.mulf %23, %24 : vector<8x640xf32>
      %c0_19 = arith.constant 0 : index
      %c0_20 = arith.constant 0 : index
      %26 = vector.load %arg5[%c0_19, %c0_20] : memref<1x640xf32, #tpu.memory_space<vmem>>, vector<1x640xf32>
      %27 = vector.broadcast %26 : vector<1x640xf32> to vector<8x640xf32>
      %28 = arith.addf %25, %27 : vector<8x640xf32>
      %29 = math.tanh %28 : vector<8x640xf32>
      %30 = arith.truncf %29 : vector<8x640xf32> to vector<8x640xbf16>
      %c0_21 = arith.constant 0 : index
      %c0_22 = arith.constant 0 : index
      %31 = vector.load %arg6[%c0_21, %c0_22] : memref<640x768xbf16, #tpu.memory_space<vmem>>, vector<640x768xbf16>
      %cst_23 = arith.constant dense<0.000000e+00> : vector<8x768xf32>
      %32 = tpu.matmul %30, %31, %cst_23 {dimension_numbers = #tpu.dot_dimension_numbers<[1], [0], [0], [1], [0, 0, 1, 1], [], []>} : vector<8x640xbf16>, vector<640x768xbf16>, vector<8x768xf32> -> vector<8x768xf32>
      %c0_24 = arith.constant 0 : index
      %c0_25 = arith.constant 0 : index
      %33 = vector.load %arg7[%c0_24, %c0_25] : memref<1x768xf32, #tpu.memory_space<vmem>>, vector<1x768xf32>
      %34 = vector.broadcast %33 : vector<1x768xf32> to vector<8x768xf32>
      %35 = arith.addf %32, %34 : vector<8x768xf32>
      %36 = vector.extract_strided_slice %35 {offsets = [0, 0], sizes = [8, 384], strides = [1, 1]} : vector<8x768xf32> to vector<8x384xf32>
      %37 = vector.extract_strided_slice %35 {offsets = [0, 384], sizes = [8, 384], strides = [1, 1]} : vector<8x768xf32> to vector<8x384xf32>
      %c0_26 = arith.constant 0 : index
      %c0_27 = arith.constant 0 : index
      %38 = vector.load %arg10[%c0_26, %c0_27] : memref<8x384xf32, #tpu.memory_space<vmem>>, vector<8x384xf32>
      tpu.vector_store %arg10[%c0_26, %c0_27], %36 {strides = array<i32>} : memref<8x384xf32, #tpu.memory_space<vmem>>, vector<8x384xf32>,
      %c0_28 = arith.constant 0 : index
      %c0_29 = arith.constant 0 : index
      %39 = vector.load %arg11[%c0_28, %c0_29] : memref<8x384xf32, #tpu.memory_space<vmem>>, vector<8x384xf32>
      tpu.vector_store %arg11[%c0_28, %c0_29], %37 {strides = array<i32>} : memref<8x384xf32, #tpu.memory_space<vmem>>, vector<8x384xf32>,
      %c0_30 = arith.constant 0 : index
      %c0_31 = arith.constant 0 : index
      %40 = vector.load %arg8[%c0_30, %c0_31] : memref<8x384xf32, #tpu.memory_space<vmem>>, vector<8x384xf32>
      %cst_32 = arith.constant 5.000000e-01 : f32
      %41 = vector.broadcast %cst_32 : f32 to vector<8x384xf32>
      %42 = arith.mulf %41, %37 : vector<8x384xf32>
      %43 = math.exp %42 : vector<8x384xf32>
      %44 = arith.mulf %40, %43 : vector<8x384xf32>
      %45 = arith.addf %36, %44 : vector<8x384xf32>
      %c0_33 = arith.constant 0 : index
      %c0_34 = arith.constant 0 : index
      %46 = vector.load %arg9[%c0_33, %c0_34] : memref<8x384xf32, #tpu.memory_space<vmem>>, vector<8x384xf32>
      tpu.vector_store %arg9[%c0_33, %c0_34], %45 {strides = array<i32>} : memref<8x384xf32, #tpu.memory_space<vmem>>, vector<8x384xf32>,
    } else {
    }
    return
  }
  func.func @transform_0(%arg0: i32, %arg1: i32, %arg2: memref<1xi32, #tpu.memory_space<smem>>) -> (i32, i32) {
    %c0_i32 = arith.constant 0 : i32
    return %arg0, %arg1 : i32, i32
  }
  func.func @transform_1(%arg0: i32, %arg1: i32, %arg2: memref<1xi32, #tpu.memory_space<smem>>) -> (i32, i32) {
    %c0_i32 = arith.constant 0 : i32
    %c0_i32_0 = arith.constant 0 : i32
    return %arg1, %c0_i32 : i32, i32
  }
  func.func @transform_2(%arg0: i32, %arg1: i32, %arg2: memref<1xi32, #tpu.memory_space<smem>>) -> (i32, i32) {
    %c0_i32 = arith.constant 0 : i32
    %c0_i32_0 = arith.constant 0 : i32
    %c0_i32_1 = arith.constant 0 : i32
    return %c0_i32, %c0_i32_0 : i32, i32
  }
  func.func @transform_3(%arg0: i32, %arg1: i32, %arg2: memref<1xi32, #tpu.memory_space<smem>>) -> (i32, i32) {
    %c0_i32 = arith.constant 0 : i32
    %c0_i32_0 = arith.constant 0 : i32
    %c0_i32_1 = arith.constant 0 : i32
    return %c0_i32, %c0_i32_0 : i32, i32
  }
  func.func @transform_4(%arg0: i32, %arg1: i32, %arg2: memref<1xi32, #tpu.memory_space<smem>>) -> (i32, i32) {
    %c0_i32 = arith.constant 0 : i32
    %c0_i32_0 = arith.constant 0 : i32
    %c0_i32_1 = arith.constant 0 : i32
    return %c0_i32, %c0_i32_0 : i32, i32
  }
  func.func @transform_5(%arg0: i32, %arg1: i32, %arg2: memref<1xi32, #tpu.memory_space<smem>>) -> (i32, i32) {
    %c0_i32 = arith.constant 0 : i32
    %c0_i32_0 = arith.constant 0 : i32
    return %arg0, %c0_i32 : i32, i32
  }
  func.func @transform_6(%arg0: i32, %arg1: i32, %arg2: memref<1xi32, #tpu.memory_space<smem>>) -> (i32, i32) {
    %c0_i32 = arith.constant 0 : i32
    %c0_i32_0 = arith.constant 0 : i32
    return %arg0, %c0_i32 : i32, i32
  }
  func.func @transform_7(%arg0: i32, %arg1: i32, %arg2: memref<1xi32, #tpu.memory_space<smem>>) -> (i32, i32) {
    %c0_i32 = arith.constant 0 : i32
    %c0_i32_0 = arith.constant 0 : i32
    return %arg0, %c0_i32 : i32, i32
  }
  func.func @transform_8(%arg0: i32, %arg1: i32, %arg2: memref<1xi32, #tpu.memory_space<smem>>) -> (i32, i32) {
    %c0_i32 = arith.constant 0 : i32
    %c0_i32_0 = arith.constant 0 : i32
    return %arg0, %c0_i32 : i32, i32
  }
}

</mosaic_0001>

<bundles_post_ra>
// kernel: tpu_custom_call.1
= control target key start
LH: loop header
LB: loop body
LE: loop exit
PB: predicated region body
PF: predicated region fallthrough
CT: control target
= control target key end

     0   :  { %s5054_s0 = inlined_call_operand.<no memory space> [shape: s32[1], index: 0, kind: input, shape index: {}]   ;;  %s5055_s1 = inlined_call_operand.hbm [shape: bf16[24,256], index: 1, kind: input, shape index: {}]   ;;  %s5056_s2 = inlined_call_operand.hbm [shape: bf16[256,640], index: 2, kind: input, shape index: {}]   ;;  %s5057_s3 = inlined_call_operand.vmem [shape: f32[1,640], index: 3, kind: input, shape index: {}]   ;;  %s5058_s4 = inlined_call_operand.hbm [shape: bf16[640,768], index: 4, kind: input, shape index: {}]   ;;  %s5059_s5 = inlined_call_operand.vmem [shape: f32[1,768], index: 5, kind: input, shape index: {}]   ;;  %s5060_s6 = inlined_call_operand.hbm [shape: f32[24,384], index: 6, kind: input, shape index: {}]   ;;  %s5061_s7 = inlined_call_operand.hbm [shape: f32[24,384], index: 7, kind: output, shape index: {0}]   ;;  %s5062_s8 = inlined_call_operand.hbm [shape: f32[24,384], index: 8, kind: output, shape index: {1}]   ;;  %s5063_s9 = inlined_call_operand.hbm [shape: f32[24,384], index: 9, kind: output, shape index: {2}]  }
   0x1   :  { %5079 = sst [smem:[#allocation31_spill]] %s5055_s1 }
   0x2   :  { %5080 = sst [smem:[#allocation32_spill]] %s5056_s2 }
   0x3   :  { %5081 = sst [smem:[#allocation33_spill]] %s5057_s3 }
   0x4   :  { %5082 = sst [smem:[#allocation34_spill]] %s5058_s4 }
   0x5   :  { %5083 = sst [smem:[#allocation35_spill]] %s5059_s5 }
   0x6   :  { %5084 = sst [smem:[#allocation36_spill]] %s5061_s7 }
   0x7   :  { %5085 = sst [smem:[#allocation37_spill]] %s5062_s8 }
   0x8   :  { %5086 = sst [smem:[#allocation38_spill]] %s5063_s9 }
   0x9   :  { %16 = vsyncpa [#allocation7], 0 }
   0xa   :  { %18 = vsyncpa [#allocation7 + $0x1], 0 }
   0xb   :  { %19 = vsyncpa [#allocation10], 0 }
   0xc   :  { %21 = vsyncpa [#allocation10 + $0x1], 0 }
   0xd   :  { %22 = vsyncpa [#allocation13], 0 }
   0xe   :  { %24 = vsyncpa [#allocation13 + $0x1], 0 }
   0xf   :  { %25 = vsyncpa [#allocation8], 0 }
  0x10   :  { %27 = vsyncpa [#allocation8 + $0x1], 0 }
  0x11   :  { %28 = vsyncpa [#allocation16], 0 }
  0x12   :  { %30 = vsyncpa [#allocation16 + $0x1], 0  ;;  %s4422_s29 = smov 0   ;;  %s4424_s30 = smov 0  }
  0x13   :  { %s4426_s10 = smov 0   ;;  %s4428_s11 = smov 0  }
  0x14   :  { %s4430_s12 = smov 0   ;;  %s4432_s13 = smov 0  }
  0x15   :  { %s4434_s14 = smov 0   ;;  %s4436_s15 = smov 0  }
  0x16   :  { %s4438_s16 = smov 0   ;;  %s4440_s17 = smov 0  }
  0x17   :  { %s4442_s18 = smov 0   ;;  %s4444_s19 = smov 0  }
  0x18   :  { %s4446_s20 = smov 0   ;;  %s4448_s21 = smov 0  }
  0x19 LB: > { %5087 = sst [smem:[#allocation24_spill]] %s4334_s16  ;;  %s4493_s22 = sadd.s32 4294967295, %s4354_s21   ;;  %s4354_s21 = sphi %s4448_s21, %s36_s21   ;;  %s4350_s20 = sphi %s4446_s20, %s5137_s20   ;;  %s4346_s19 = sphi %s4444_s19, %s5148_s19   ;;  %s4342_s18 = sphi %s4442_s18, %s5147_s18   ;;  %s4338_s17 = sphi %s4440_s17, %s5146_s17   ;;  %s4334_s16 = sphi %s4438_s16, %s5134_s16   ;;  %s4330_s15 = sphi %s4436_s15, %s5145_s15   ;;  %s4326_s14 = sphi %s4434_s14, %s5144_s14   ;;  %s4322_s13 = sphi %s4432_s13, %s5143_s13   ;;  %s4318_s12 = sphi %s4430_s12, %s5142_s12   ;;  %s4314_s11 = sphi %s4428_s11, %s5141_s11   ;;  %s4310_s10 = sphi %s4426_s10, %s5140_s10   ;;  %s4306_s30 = sphi %s4424_s30, %s5139_s30   ;;  %s4302_s29 = sphi %s4422_s29, %s5138_s29  }
  0x1a   : > { %5088 = sst [smem:[#allocation25_spill]] %s4342_s18  ;;  %p3051_p0 = scmp.ge.s32.totalorder %s4354_s21, 1 }
  0x1b   : > { %5089 = sst [smem:[#allocation26_spill]] %s4350_s20  ;;  %p5067_p1 = scmp.eq.s32.totalorder %s4493_s22, 0 }
  0x1c   : > { %p274_p2 = scmp.lt.s32.totalorder %s4354_s21, 7  ;;  %s4356_s24 = smov [#allocation11]  }
  0x1d   : > { %s289_s0 = sshll.u32 %s4356_s24, 4  ;;  %s5092_s4 = sld [smem:[#allocation34_spill]]  ;;  %s290_s0 = int_to_ptr.vmem [resolvable:$true] %s289_s0 }
  0x1e   : > { %p4498_p3 = pnand %p3051_p0, %p274_p2 }
  0x20   : > { %s5090_s23 = scalar_select %p4498_p3, 1, 0 }
  0x21   : > { %p3433_p4 = pneg %p4498_p3 }
  0x23   : > { %p4506_p5 = pnand %p3433_p4, %p5067_p1  ;;  %s4018_s28 = scalar_lea.hbm %s5092_s4, 30720 }
  0x24   : > { %p4019_p6 = scmp.ne.s32.totalorder %s5092_s4, %s4018_s28  ;;  %p4025_p10 = scmp.lt.u32.totalorder %s4018_s28, %s5092_s4 }
  0x25   : > { %p4020_p7 = pneg %p4506_p5 }
  0x27   : > { %p4021_p8 = pnand %p4020_p7, %p4019_p6 }
  0x29   : > { %p4022_p9 = pneg %p4021_p8 }
  0x2b   : > { %p4027_p11 = pnand %p4025_p10, %p4022_p9 }
  0x2d   : > { %4030 = shalt.err (!%p4027_p11)
}
  0x2e   : > { %s4031_s18 = scalar_lea.vmem %s290_s0, 30720  ;;  %p4039_p2 = scmp.lt.s32.totalorder %s290_s0, %s290_s0 }
  0x2f   : > { %p4032_p12 = scmp.ne.s32.totalorder %s290_s0, %s4031_s18  ;;  %p4040_p4 = scmp.lt.s32.totalorder %s4031_s18, %s4031_s18 }
  0x31   : > { %p4034_p13 = pnand %p4032_p12, %p4020_p7  ;;  %p4041_p1 = por %p4040_p4, %p4039_p2 }
  0x33   : > { %p4035_p0 = pneg %p4034_p13 }
  0x35   : > { %p4042_p3 = pnand %p4041_p1, %p4035_p0 }
  0x37   : > { %4045 = shalt.err (!%p4042_p3)
}
  0x38   : > { %s4357_s7 = smov 384   ;;  %s4358_s8 = smov 24  }
  0x39   : > { %3436 = dma.hbm_to_vmem [thread:$0]  (!%p4506_p5), %s5092_s4, 30720, %s290_s0, [#allocation10], %s4357_s7, %s4357_s7, %s4358_s8  }
  0x3a   : > { %s45_s26 = sadd.s32 1, %s4346_s19  ;;  %s48_s27 = sadd.s32 1, %s4350_s20 }
  0x3b   : > { %p46_p1 = scmp.ge.s32.totalorder %s45_s26, 2  ;;  %s57_s28 = sadd.s32 1, %s4334_s16 }
  0x3c   : > { %p64_p3 = scmp.ne.s32.totalorder %s4334_s16, %s4330_s15  ;;  %p5073_p5 = scmp.eq.s32.totalorder %s4354_s21, 0 }
  0x3d   : > { %s5150_s26 = smov (%p46_p1, %s45_s26), 0  ;;  %s5152_s27 = smov (!%p46_p1, %s48_s27), %s4350_s20 }
  0x3e   : > { %5093 = sst [smem:[#allocation27_spill]] %s5150_s26  ;;  %s53_s25 = ssub.s32 %s4346_s19, %s5150_s26 }
  0x3f   : > { %p50_p6 = scmp.ge.s32.totalorder %s5152_s27, 3  ;;  %p70_p7 = scmp.ne.s32.totalorder %s4330_s15, %s4326_s14 }
  0x40   : > { %p4541_p8 = por %p5073_p5, %p64_p3  ;;  %p81_p9 = scmp.eq.s32.totalorder %s53_s25, 0 }
  0x41   : > { %s5154_s27 = smov (%p50_p6, %s5152_s27), 0  ;;  %p5096_p10 = scmp.eq.s32.totalorder %s4493_s22, 0 }
  0x42   : > { %5095 = sst [smem:[#allocation28_spill]] %s5154_s27  ;;  %s83_s7 = sadd.s32 1, %s4322_s13 }
  0x43   : > { %p4549_p11 = por %p5096_p10, %p70_p7  ;;  %s4556_s14 = ssub.s32 %s4350_s20, %s5154_s27 }
  0x44   : > { %p90_p12 = scmp.ne.s32.totalorder %s4322_s13, %s4318_s12  ;;  %s54_s8 = sor.u32 %s53_s25, %s4556_s14 }
  0x45   : > { %s5097_s24 = scalar_select %p4549_p11, 1, 0 }
  0x46   : > { %p96_p13 = scmp.ne.s32.totalorder %s4318_s12, %s4314_s11  ;;  %p55_p0 = scmp.eq.s32.totalorder %s54_s8, 0 }
  0x47   : > { %p4565_p2 = por %p90_p12, %p5073_p5  ;;  %p5101_p4 = pmov %p5096_p10 }
  0x48   : > { %s4570_s18 = scalar_select %p81_p9, %s4322_s13, %s83_s7  }
  0x49   : > { %s4573_s4 = scalar_select %p55_p0, %s4334_s16, %s57_s28  }
  0x4a   : > { %5099 = sst [smem:[#allocation29_spill]] %s4570_s18  ;;  %p4577_p1 = por %p96_p13, %p5101_p4 }
  0x4b   : > { %5100 = sst [smem:[#allocation30_spill]] %s4573_s4  ;;  %p5072_p6 = scmp.lt.s32.totalorder %s4354_s21, 6 }
  0x4c   : > { %s5102_s25 = scalar_select %p4577_p1, 1, 0 }
  0x4d   : > { %s306_s11 = sand.u32 1, %s4334_s16   ;;  %s3055_s27 = sshll.u32 %s4350_s20, 1 }
  0x4e   : > { %s3054_s8 = sshll.u32 %s306_s11, 2  ;;  %s315_s26 = sadd.s32 %s4346_s19, %s3055_s27 }
  0x4f   : > { %s310_s5 = scalar_lea.vmem [#allocation6], %s3054_s8  ;;  %s3056_s7 = sshll.u32 %s315_s26, 6 }
  0x50   : > { %s319_s3 = sshll.u32 %s310_s5, 4  ;;  %s5103_s1 = sld [smem:[#allocation31_spill]]  ;;  %s4586_s3 = int_to_ptr.vmem [resolvable:$true] %s319_s3 }
  0x51   : > { %p4597_p7 = pnand %p5072_p6, %p4541_p8  ;;  %p4606_p9 = pnand %p5072_p6, %p4565_p2 }
  0x52   : > { %s326_s27 = sand.u32 1, %s4354_s21   ;;  %s307_s0 = scalar_lea.sflag [#allocation7], %s306_s11 }
  0x53   : > { %p4048_p12 = pneg %p4597_p7 }
  0x56   : > { %s4591_s4 = scalar_lea.hbm %s5103_s1, %s3056_s7  ;;  %s4051_s28 = scalar_lea.hbm %s5103_s1, 384 }
  0x57   : > { %s4046_s18 = scalar_lea.hbm %s4591_s4, 64  ;;  %p4052_p0 = scmp.lt.u32.totalorder %s4591_s4, %s5103_s1 }
  0x58   : > { %p4047_p10 = scmp.ne.s32.totalorder %s4591_s4, %s4046_s18  ;;  %p4053_p2 = scmp.lt.u32.totalorder %s4051_s28, %s4046_s18 }
  0x59   : > { %p4055_p6 = scmp.lt.u32.totalorder %s4046_s18, %s4591_s4 }
  0x5a   : > { %p4049_p8 = pnand %p4048_p12, %p4047_p10  ;;  %p4054_p4 = por %p4053_p2, %p4052_p0 }
  0x5c   : > { %p4050_p13 = pneg %p4049_p8  ;;  %p4056_p5 = por %p4055_p6, %p4054_p4 }
  0x5e   : > { %p4057_p3 = pnand %p4056_p5, %p4050_p13 }
  0x60   : > { %4060 = shalt.err (!%p4057_p3)
}
  0x61   : > { %s4061_s11 = scalar_lea.vmem %s4586_s3, 64  ;;  %s4359_s8 = smov [#allocation6]  }
  0x62   : > { %p4062_p10 = scmp.ne.s32.totalorder %s4586_s3, %s4061_s11  ;;  %s4066_s7 = sshll.u32 %s4359_s8, 4  ;;  %s4067_s7 = int_to_ptr.vmem [resolvable:$false] %s4066_s7 }
  0x63   : > { %s4068_s5 = scalar_lea.vmem %s4067_s7, 128  ;;  %p4069_p11 = scmp.lt.s32.totalorder %s4586_s3, %s4067_s7 }
  0x64   : > { %p4064_p8 = pnand %p4062_p10, %p4048_p12  ;;  %p4070_p0 = scmp.lt.s32.totalorder %s4068_s5, %s4061_s11 }
  0x66   : > { %p4065_p1 = pneg %p4064_p8  ;;  %p4071_p2 = por %p4070_p0, %p4069_p11 }
  0x68   : > { %p4072_p6 = pnand %p4071_p2, %p4065_p1 }
  0x6a   : > { %4075 = shalt.err (!%p4072_p6)
}
  0x6b   : > { %3440 = dma.hbm_to_vmem [thread:$0]  (!%p4597_p7), %s4591_s4, 64, %s4586_s3, %s307_s0  }
  0x6c   : > { %s328_s18 = sand.u32 1, %s4322_s13   ;;  %s5106_s28 = smul.u32 5120, %s4346_s19 }
  0x6d   : > { %s5107_s2 = sld [smem:[#allocation32_spill]]  ;;  %s3408_s16 = smul.u32 320, %s328_s18 }
  0x6e   : > { %s4648_s1 = scalar_lea.sflag [#allocation10], %s326_s27  ;;  %p4078_p11 = pneg %p4606_p9 }
  0x6f   : > { %s330_s11 = scalar_lea.vmem [#allocation9], %s3408_s16 }
  0x70   : > { %s338_s5 = sshll.u32 %s330_s11, 4  ;;  %s4644_s5 = int_to_ptr.vmem [resolvable:$true] %s338_s5 }
  0x73   : > { %s4642_s7 = scalar_lea.hbm %s5107_s2, %s5106_s28  ;;  %s4081_s28 = scalar_lea.hbm %s5107_s2, 10240 }
  0x74   : > { %s4076_s3 = scalar_lea.hbm %s4642_s7, 5120  ;;  %p4082_p7 = scmp.lt.u32.totalorder %s4642_s7, %s5107_s2 }
  0x75   : > { %p4077_p5 = scmp.ne.s32.totalorder %s4642_s7, %s4076_s3  ;;  %p4083_p12 = scmp.lt.u32.totalorder %s4081_s28, %s4076_s3 }
  0x76   : > { %p4085_p4 = scmp.lt.u32.totalorder %s4076_s3, %s4642_s7 }
  0x77   : > { %p4079_p1 = pnand %p4078_p11, %p4077_p5  ;;  %p4084_p13 = por %p4083_p12, %p4082_p7 }
  0x79   : > { %p4080_p3 = pneg %p4079_p1  ;;  %p4086_p10 = por %p4085_p4, %p4084_p13 }
  0x7b   : > { %p4087_p8 = pnand %p4086_p10, %p4080_p3 }
  0x7d   : > { %4090 = shalt.err (!%p4087_p8)
}
  0x7e   : > { %s4091_s27 = scalar_lea.vmem %s4644_s5, 5120  ;;  %s4360_s8 = smov [#allocation9]  }
  0x7f   : > { %p4092_p0 = scmp.ne.s32.totalorder %s4644_s5, %s4091_s27  ;;  %s4096_s16 = sshll.u32 %s4360_s8, 4  ;;  %s4097_s16 = int_to_ptr.vmem [resolvable:$false] %s4096_s16 }
  0x80   : > { %s4098_s11 = scalar_lea.vmem %s4097_s16, 10240  ;;  %p4099_p5 = scmp.lt.s32.totalorder %s4644_s5, %s4097_s16 }
  0x81   : > { %p4094_p2 = pnand %p4092_p0, %p4078_p11  ;;  %p4100_p1 = scmp.lt.s32.totalorder %s4098_s11, %s4091_s27 }
  0x83   : > { %p4095_p6 = pneg %p4094_p2  ;;  %p4101_p7 = por %p4100_p1, %p4099_p5 }
  0x85   : > { %p4102_p12 = pnand %p4101_p7, %p4095_p6 }
  0x87   : > { %4105 = shalt.err (!%p4102_p12)
}
  0x88   : > { %s4361_s3 = smov 320   ;;  %s4362_s4 = smov 20  }
  0x89   : > { %3443 = dma.hbm_to_vmem [thread:$0]  (!%p4606_p9), %s4642_s7, 5120, %s4644_s5, %s4648_s1, %s4361_s3, %s4361_s3, %s4362_s4  }
  0x8a   : > { %s5076_s0 = sadd.s32 4294967294, %s4354_s21   ;;  %s172_s28 = sadd.s32 1, %s4310_s10 }
  0x8b   : > { %p5108_p11 = scmp.eq.s32.totalorder %s4556_s14, 0  ;;  %p179_p3 = scmp.ne.s32.totalorder %s4310_s10, %s4306_s30 }
  0x8c   : > { %p185_p13 = scmp.ne.s32.totalorder %s4306_s30, %s4302_s29  ;;  %p209_p4 = scmp.eq.s32.totalorder %s4493_s22, 5 }
  0x8d   : > { %s4681_s18 = scalar_select %p5108_p11, %s4310_s10, %s172_s28  }
  0x8e   : > { %p215_p10 = scmp.eq.s32.totalorder %s5076_s0, 5  ;;  %p5109_p8 = scmp.eq.s32.totalorder %s4354_s21, 0 }
  0x8f   : > { %p5110_p2 = scmp.eq.s32.totalorder %s4493_s22, 0  ;;  %p4698_p5 = por %p209_p4, %p179_p3 }
  0x90   : > { %p181_p0 = por %p179_p3, %p5109_p8  ;;  %p4702_p9 = por %p215_p10, %p185_p13 }
  0x91   : > { %p4694_p6 = por %p185_p13, %p5110_p2  ;;  %s348_s14 = sand.u32 1, %s4310_s10  }
  0x92   : > { %s5112_s26 = scalar_select %p4698_p5, 1, 0 }
  0x93   : > { %s5113_s1 = scalar_select %p4702_p9, 1, 0 }
  0x94   : > { %s3411_s7 = smul.u32 384, %s4350_s20  ;;  %p5114_p1 = scmp.lt.s32.totalorder %s4354_s21, 6 }
  0x95   : > { %s3410_s5 = smul.u32 24, %s348_s14  ;;  %s349_s28 = scalar_lea.sflag [#allocation13], %s348_s14 }
  0x96   : > { %p4710_p7 = pnand %p5114_p1, %p181_p0  ;;  %s4717_s11 = scalar_lea.hbm %s5060_s6, %s3411_s7 }
  0x97   : > { %s352_s3 = scalar_lea.vmem [#allocation12], %s3410_s5  ;;  %s4106_s0 = scalar_lea.hbm %s4717_s11, 384 }
  0x98   : > { %s360_s4 = sshll.u32 %s352_s3, 4  ;;  %p4107_p12 = scmp.ne.s32.totalorder %s4717_s11, %s4106_s0  ;;  %s4719_s4 = int_to_ptr.vmem [resolvable:$true] %s360_s4 }
  0x99   : > { %p4108_p11 = pneg %p4710_p7  ;;  %s4111_s16 = scalar_lea.hbm %s5060_s6, 1152 }
  0x9a   : > { %p4112_p4 = scmp.lt.u32.totalorder %s4717_s11, %s5060_s6  ;;  %p4113_p10 = scmp.lt.u32.totalorder %s4111_s16, %s4106_s0 }
  0x9b   : > { %p4109_p3 = pnand %p4108_p11, %p4107_p12  ;;  %p4115_p0 = scmp.lt.u32.totalorder %s4106_s0, %s4717_s11 }
  0x9c   : > { %p4114_p8 = por %p4113_p10, %p4112_p4 }
  0x9d   : > { %p4110_p13 = pneg %p4109_p3 }
  0x9e   : > { %p4116_p2 = por %p4115_p0, %p4114_p8 }
  0xa0   : > { %p4117_p1 = pnand %p4116_p2, %p4110_p13 }
  0xa2   : > { %4120 = shalt.err (!%p4117_p1)
}
  0xa3   : > { %s4121_s14 = scalar_lea.vmem %s4719_s4, 384  ;;  %s4363_s5 = smov [#allocation12]  }
  0xa4   : > { %p4122_p12 = scmp.ne.s32.totalorder %s4719_s4, %s4121_s14  ;;  %s4126_s3 = sshll.u32 %s4363_s5, 4  ;;  %s4127_s3 = int_to_ptr.vmem [resolvable:$false] %s4126_s3 }
  0xa5   : > { %s4128_s2 = scalar_lea.vmem %s4127_s3, 768  ;;  %p4129_p5 = scmp.lt.s32.totalorder %s4719_s4, %s4127_s3 }
  0xa6   : > { %p4124_p3 = pnand %p4122_p12, %p4108_p11  ;;  %p4130_p4 = scmp.lt.s32.totalorder %s4128_s2, %s4121_s14 }
  0xa8   : > { %p4125_p9 = pneg %p4124_p3  ;;  %p4131_p10 = por %p4130_p4, %p4129_p5 }
  0xaa   : > { %p4132_p8 = pnand %p4131_p10, %p4125_p9 }
  0xac   : > { %4135 = shalt.err (!%p4132_p8)
}
  0xad   : > { %3446 = dma.hbm_to_vmem [thread:$0]  (!%p4710_p7), %s4717_s11, 384, %s4719_s4, %s349_s28  }
  0xae   : > { %p5116_p13 = scmp.ne.s32.totalorder %s5090_s23, 0 }
  0xaf   : > { %s371_s20 = sand.u32 (!%p5116_p13), 1, %s4330_s15   ;;  %p5117_p11 = scmp.ne.s32.totalorder (!%p5116_p13), %s5097_s24, 0 }
  0xb0   : > { %369 = sbr.rel (%p5116_p13) target bundleno = 1031 (0x407), region = 44  ;;  %s4749_s0 = sshll.u32 (!%p5116_p13), %s371_s20, 2 }
  0xb1   : > { %s372_s8 = scalar_lea.sflag (!%p5116_p13), [#allocation7], %s371_s20  ;;  %s375_s7 = scalar_lea.vmem (!%p5116_p13), [#allocation6], %s4749_s0 }
  0xb7   : > { %4277 = dma.done.wait (%p5117_p11), %s372_s8, 64  }
  0xb8   : > { %4279 = vsyncadd (%p5117_p11), %s372_s8, 4294967232  ;;  %s380_s27 = sand.u32 1, %s4493_s22   ;;  %s382_s23 = sand.u32 1, %s4318_s12  }
  0xb9   : > { %s3412_s11 = smul.u32 320, %s382_s23  ;;  %s381_s4 = scalar_lea.sflag [#allocation10], %s380_s27 }
  0xba   : > { %p5118_p5 = scmp.ne.s32.totalorder %s5102_s25, 0 }
  0xbb   : > { %s4760_s28 = scalar_lea.vmem [#allocation9], %s3412_s11 }
  0xbc   : > { %4281 = dma.done.wait (%p5118_p5), %s381_s4, 5120  }
  0xbd   : > { %4283 = vsyncadd (%p5118_p5), %s381_s4, 4294962176  ;;  %p5119_p9 = scmp.eq.s32.totalorder %s4493_s22, 0 }
  0xbf   : > { %4285 = dma.done.wait (%p5119_p9), [#allocation10], 30720   ;;  %p5120_p7 = pmov %p5119_p9 }
  0xc0   : > { %s4771_s24 = sand.u32 1, %s4306_s30  }
  0xc1   : > { %4287 = vsyncadd (%p5120_p7), [#allocation10], 4294936576  ;;  %s3413_s16 = smul.u32 24, %s4771_s24  ;;  %s394_s14 = scalar_lea.sflag [#allocation13], %s4771_s24 }
  0xc3   : > { %s4775_s5 = scalar_lea.vmem [#allocation12], %s3413_s16 }
  0xc4   : > { %4289 = dma.done.wait (%p4694_p6), %s394_s14, 384  }
  0xc5   : > { %4291 = vsyncadd (%p4694_p6), %s394_s14, 4294966912  ;;  %s4781_s25 = scalar_lea.vmem [#allocation14], %s3413_s16  ;;  %s4783_s3 = scalar_lea.vmem [#allocation15], %s3413_s16 }
  0xc6   : > { %s4785_s2 = scalar_lea.vmem [#allocation17], %s3413_s16  ;;  %p3064_p0 = scmp.ne.s32.totalorder %s4338_s17, 0 }
  0xc7   : > { %vm461_vm0 = vcmask (!%p3064_p0), 7168   ;;  %v4364_v0 = vmov (!%p3064_p0), 0.0  }
  0xc8   : > { %455 = sbr.rel (%p3064_p0) target bundleno = 207 (0xcf), region = 64  ;;  %456 = vst [vmem:[#allocation2] sm:$0xff] (!%p3064_p0), %v4364_v0  ;;  %457 = vst [vmem:[#allocation2 + $0x8] sm:$0xff] (!%p3064_p0), %v4364_v0 }
  0xc9   : > { %458 = vst [vmem:[#allocation2 + $0x10] sm:$0xff] (!%p3064_p0), %v4364_v0  ;;  %459 = vst [vmem:[#allocation2 + $0x18] sm:$0xff] (!%p3064_p0), %v4364_v0 }
  0xca   : > { %460 = vst [vmem:[#allocation2 + $0x20] sm:$0xff] (!%p3064_p0), %v4364_v0  ;;  %462 = vst.msk [vmem:[#allocation3] sm:$0xff] (!%p3064_p0), %vm461_vm0, %v4364_v0 }
  0xcf PF: > { %v3583_v1 = vld [vmem:[%s4760_s28 + $0x4] ss:$20 sps:$4 sm:$0xff]   ;;  %v3585_v2 = vld [vmem:[%s4760_s28] ss:$20 sps:$4 sm:$0xff]   ;;  %v4365_v3 = vmov 0   ;;  %v4366_v35 = vmov 0.0  }
  0xd0   : > { %765 = vmatprep.mubr.bf16.mxu0 %v4365_v3  ;;  %806 = vmatprep.mubr.bf16.mxu1 %v4365_v3  ;;  %v3586_v4 = vld [vmem:[%s4760_s28 + $0x2c] ss:$20 sps:$4 sm:$0xff]   ;;  %v3588_v5 = vld [vmem:[%s4760_s28 + $0x28] ss:$20 sps:$4 sm:$0xff]   ;;  %v3591_v7 = vld [vmem:[%s4760_s28 + $0x50] ss:$20 sps:$4 sm:$0xff]  }
  0xd1   : > { %733 = vmatprep.subr.bf16.mxu0 %v3583_v1  ;;  %v3589_v6 = vld [vmem:[%s4760_s28 + $0x54] ss:$20 sps:$4 sm:$0xff]   ;;  %v3592_v8 = vld [vmem:[%s4760_s28 + $0x7c] ss:$20 sps:$4 sm:$0xff]   ;;  %v3594_v9 = vld [vmem:[%s4760_s28 + $0x78] ss:$20 sps:$4 sm:$0xff]  }
  0xd2   : > { %734 = vmatpush1.bf16.msra.mxu0 %v3585_v2  ;;  %v3595_v10 = vld [vmem:[%s4760_s28 + $0xa4] ss:$20 sps:$4 sm:$0xff]   ;;  %v3606_v11 = vld [vmem:[%s4760_s28 + $0xc] ss:$20 sps:$4 sm:$0xff]   ;;  %v3609_v12 = vld [vmem:[%s4760_s28 + $0x8] ss:$20 sps:$4 sm:$0xff]  }
  0xd3   : > { %735 = vmatprep.subr.bf16.mxu0 %v3586_v4  ;;  %v4801_v13 = vld [vmem:[%s375_s7] sm:$0xf]  ;;  %774 = vmatprep.subr.bf16.mxu1 %v3606_v11  ;;  %v3610_v14 = vld [vmem:[%s4760_s28 + $0x34] ss:$20 sps:$4 sm:$0xff]   ;;  %v3612_v16 = vld [vmem:[%s4760_s28 + $0x30] ss:$20 sps:$4 sm:$0xff]  }
  0xd4   : > { %v464_v15 = vunpack.c.l.bf16 %v4801_v13  ;;  %775 = vmatpush1.bf16.msra.mxu1 %v3609_v12  ;;  %v3597_v17 = vld [vmem:[%s4760_s28 + $0xa0] ss:$20 sps:$4 sm:$0xff]   ;;  %v3614_v18 = vld [vmem:[%s4760_s28 + $0x5c] ss:$20 sps:$4 sm:$0xff]   ;;  %v3616_v22 = vld [vmem:[%s4760_s28 + $0x58] ss:$20 sps:$4 sm:$0xff]  }
  0xd5   : > { %776 = vmatprep.subr.bf16.mxu1 %v3610_v14  ;;  %v3598_v20 = vld [vmem:[%s4760_s28 + $0xcc] ss:$20 sps:$4 sm:$0xff]   ;;  %v3600_v21 = vld [vmem:[%s4760_s28 + $0xc8] ss:$20 sps:$4 sm:$0xff]   ;;  %v3618_v23 = vld [vmem:[%s4760_s28 + $0x84] ss:$20 sps:$4 sm:$0xff]  }
  0xd6   : > { %736 = vmatpush1.bf16.msra.mxu0 %v3588_v5  ;;  %v466_v19 = vmul.f32 %v464_v15, %v464_v15  ;;  %v3601_v24 = vld [vmem:[%s4760_s28 + $0xf4] ss:$20 sps:$4 sm:$0xff]   ;;  %v3603_v25 = vld [vmem:[%s4760_s28 + $0xf0] ss:$20 sps:$4 sm:$0xff]   ;;  %v3622_v27 = vld [vmem:[%s4760_s28 + $0xac] ss:$20 sps:$4 sm:$0xff]  }
  0xd7   : > { %737 = vmatprep.subr.bf16.mxu0 %v3589_v6  ;;  %v3620_v26 = vld [vmem:[%s4760_s28 + $0x80] ss:$20 sps:$4 sm:$0xff]   ;;  %v3604_v28 = vld [vmem:[%s4760_s28 + $0x11c] ss:$20 sps:$4 sm:$0xff]   ;;  %v3608_v30 = vld [vmem:[%s4760_s28 + $0x118] ss:$20 sps:$4 sm:$0xff]  }
  0xd8   : > { %467 = vadd.xlane.f32.xlu0 %v466_v19  ;;  %777 = vmatpush1.bf16.msra.mxu1 %v3612_v16  ;;  %v3624_v29 = vld [vmem:[%s4760_s28 + $0xa8] ss:$20 sps:$4 sm:$0xff]   ;;  %v3628_v32 = vld [vmem:[%s4760_s28 + $0xd0] ss:$20 sps:$4 sm:$0xff]   ;;  %v3632_v36 = vld [vmem:[%s4760_s28 + $0xf8] ss:$20 sps:$4 sm:$0xff]  }
  0xd9   : > { %778 = vmatprep.subr.bf16.mxu1 %v3614_v18  ;;  %v3626_v31 = vld [vmem:[%s4760_s28 + $0xd4] ss:$20 sps:$4 sm:$0xff]   ;;  %v3613_v33 = vld [vmem:[%s4760_s28 + $0x10] ss:$20 sps:$4 sm:$0xff]   ;;  %v3617_v37 = vld [vmem:[%s4760_s28 + $0x38] ss:$20 sps:$4 sm:$0xff]  }
  0xda   : > { %738 = vmatpush1.bf16.msra.mxu0 %v3591_v7  ;;  %v3630_v34 = vld [vmem:[%s4760_s28 + $0xfc] ss:$20 sps:$4 sm:$0xff]   ;;  %v3634_v38 = vld [vmem:[%s4760_s28 + $0x124] ss:$20 sps:$4 sm:$0xff]   ;;  %vm4367_vm1 = vmmov 0   ;;  %vm470_vm2 = vcmask 7168  }
  0xdb   : > { %739 = vmatprep.subr.bf16.mxu0 %v3592_v8  ;;  %v3636_v39 = vld [vmem:[%s4760_s28 + $0x120] ss:$20 sps:$4 sm:$0xff]   ;;  %v3625_v41 = vld [vmem:[%s4760_s28 + $0x88] ss:$20 sps:$4 sm:$0xff]   ;;  %v3629_v42 = vld [vmem:[%s4760_s28 + $0xb0] ss:$20 sps:$4 sm:$0xff]  }
  0xdc   : > { %779 = vmatpush1.bf16.msra.mxu1 %v3616_v22  ;;  %v3621_v40 = vld [vmem:[%s4760_s28 + $0x60] ss:$20 sps:$4 sm:$0xff]   ;;  %v3633_v43 = vld [vmem:[%s4760_s28 + $0xd8] ss:$20 sps:$4 sm:$0xff]   ;;  %v3638_v45 = vld [vmem:[%s4760_s28 + $0x128] ss:$20 sps:$4 sm:$0xff]  }
  0xdd   : > { %780 = vmatprep.subr.bf16.mxu1 %v3618_v23  ;;  %v3637_v44 = vld [vmem:[%s4760_s28 + $0x100] ss:$20 sps:$4 sm:$0xff]   ;;  %v472_v49 = vld [vmem:[#allocation2] sm:$0xff]  ;;  %v474_v57 = vld [vmem:[#allocation2 + $0x10] sm:$0xff]  ;;  %p3105_p6 = scmp.ne.s32.totalorder %s4338_s17, 1 }
  0xde   : > { %740 = vmatpush1.bf16.msra.mxu0 %v3594_v9  ;;  %v465_v46 = vld [vmem:[#allocation3] sm:$0xff]  ;;  %v475_v58 = vld [vmem:[#allocation2 + $0x18] sm:$0xff]  ;;  %v476_v1 = vld [vmem:[#allocation2 + $0x20] sm:$0xff]  ;;  %v4368_v8 = vmov (!%p3105_p6), 0   ;;  %s5121_s20 = sld [smem:[#allocation33_spill]] (!%p3105_p6)  ;;  %s5122_s7 = sld [smem:[#allocation35_spill]] (!%p3105_p6) }
  0xdf   : > { %741 = vmatprep.subr.bf16.mxu0 %v3595_v10  ;;  %v473_v50 = vld [vmem:[#allocation2 + $0x8] sm:$0xff]  ;;  %3639 = vset.pattern.permute.xlu0 (!%p3105_p6), %v4368_v8  ;;  %v3640_v10 = vld [vmem:[#allocation11 + $0x4] ss:$24 sps:$4 sm:$0xff] (!%p3105_p6)   ;;  %v3644_v12 = vld [vmem:[#allocation11] ss:$24 sps:$4 sm:$0xff] (!%p3105_p6)  }
  0xe0   : > { %781 = vmatpush1.bf16.msra.mxu1 %v3620_v26  ;;  %v3642_v11 = vld [vmem:[#allocation11 + $0x304] ss:$24 sps:$4 sm:$0xff] (!%p3105_p6)   ;;  %v3646_v14 = vld [vmem:[#allocation11 + $0x34] ss:$24 sps:$4 sm:$0xff] (!%p3105_p6)   ;;  %v3650_v16 = vld [vmem:[#allocation11 + $0x30] ss:$24 sps:$4 sm:$0xff] (!%p3105_p6)  }
  0xe1   : > { %782 = vmatprep.subr.bf16.mxu1 %v3622_v27  ;;  %v3648_v15 = vld [vmem:[#allocation11 + $0x334] ss:$24 sps:$4 sm:$0xff] (!%p3105_p6)   ;;  %v3652_v18 = vld [vmem:[#allocation11 + $0x64] ss:$24 sps:$4 sm:$0xff] (!%p3105_p6)   ;;  %v3663_v26 = vld [vmem:[#allocation11 + $0x390] ss:$24 sps:$4 sm:$0xff] (!%p3105_p6)  }
  0xe2   : > { %742 = vmatpush1.bf16.msra.mxu0 %v3597_v17  ;;  %v3651_v17 = vld [vmem:[#allocation11 + $0x330] ss:$24 sps:$4 sm:$0xff] (!%p3105_p6)   ;;  %v3654_v19 = vld [vmem:[#allocation11 + $0x364] ss:$24 sps:$4 sm:$0xff] (!%p3105_p6)   ;;  %v3658_v22 = vld [vmem:[#allocation11 + $0x94] ss:$24 sps:$4 sm:$0xff] (!%p3105_p6)  }
  0xe3   : > { %743 = vmatprep.subr.bf16.mxu0 %v3598_v20  ;;  %v3656_v20 = vld [vmem:[#allocation11 + $0x60] ss:$24 sps:$4 sm:$0xff] (!%p3105_p6)   ;;  %v3660_v23 = vld [vmem:[#allocation11 + $0x394] ss:$24 sps:$4 sm:$0xff] (!%p3105_p6)   ;;  %v3664_v27 = vld [vmem:[#allocation11 + $0xc4] ss:$24 sps:$4 sm:$0xff] (!%p3105_p6)  }
  0xe4   : > { %783 = vmatpush1.bf16.msra.mxu1 %v3624_v29  ;;  %v3668_v29 = vld [vmem:[#allocation11 + $0xc0] ss:$24 sps:$4 sm:$0xff] (!%p3105_p6)  }
  0xe5   : > { %784 = vmatprep.subr.bf16.mxu1 %v3626_v31  ;;  %v3670_v31 = vld [vmem:[#allocation11 + $0xf4] ss:$24 sps:$4 sm:$0xff] (!%p3105_p6)  }
  0xe6   : > { %744 = vmatpush1.bf16.msra.mxu0 %v3600_v21  ;;  %v3657_v21 = vld [vmem:[#allocation11 + $0x360] ss:$24 sps:$4 sm:$0xff] (!%p3105_p6)  }
  0xe7   : > { %745 = vmatprep.subr.bf16.mxu0 %v3601_v24  ;;  %v3662_v24 = vld [vmem:[#allocation11 + $0x90] ss:$24 sps:$4 sm:$0xff] (!%p3105_p6)  }
  0xe8   : > { %785 = vmatpush1.bf16.msra.mxu1 %v3628_v32  ;;  %v3672_v32 = vld [vmem:[#allocation11 + $0x3f4] ss:$24 sps:$4 sm:$0xff] (!%p3105_p6)  }
  0xe9   : > { %786 = vmatprep.subr.bf16.mxu1 %v3630_v34  ;;  %v3675_v34 = vld [vmem:[#allocation11 + $0x3f0] ss:$24 sps:$4 sm:$0xff] (!%p3105_p6)  }
  0xea   : > { %746 = vmatpush1.bf16.msra.mxu0 %v3603_v25 }
  0xeb   : > { %747 = vmatprep.subr.bf16.mxu0 %v3604_v28  ;;  %v3666_v28 = vld [vmem:[#allocation11 + $0x3c4] ss:$24 sps:$4 sm:$0xff] (!%p3105_p6)  }
  0xec   : > { %787 = vmatpush1.bf16.msra.mxu1 %v3632_v36  ;;  %v3678_v36 = vld [vmem:[#allocation11 + $0x424] ss:$24 sps:$4 sm:$0xff] (!%p3105_p6)  }
  0xed   : > { %788 = vmatprep.subr.bf16.mxu1 %v3634_v38  ;;  %v3681_v38 = vld [vmem:[#allocation11 + $0x420] ss:$24 sps:$4 sm:$0xff] (!%p3105_p6)  }
  0xee   : > { %748 = vmatpush1.bf16.msra.mxu0 %v3608_v30  ;;  %v3669_v30 = vld [vmem:[#allocation11 + $0x3c0] ss:$24 sps:$4 sm:$0xff] (!%p3105_p6)  }
  0xef   : > { %3360 = vmatprep.subr.bf16.mxu0 %v4366_v35 }
  0xf0   : > { %789 = vmatpush1.bf16.msra.mxu1 %v3636_v39  ;;  %v3682_v39 = vld [vmem:[#allocation11 + $0x154] ss:$24 sps:$4 sm:$0xff] (!%p3105_p6)  }
  0xf1   : > { %766 = vmatmul.mubr.bf16.vlgmr.msra.gmra.mrb[0].mxu0 %v4801_v13  ;;  %2401 = vmatprep.subr.bf16.mxu1 (!%p3105_p6), %v3640_v10  ;;  %v3734_v10 = vld [vmem:[#allocation11 + $0x2d0] ss:$24 sps:$4 sm:$0xff] (!%p3105_p6)  }
  0xf2   : > { %3361 = vmatpush3.bf16.msra.mxu0 %v3613_v33  ;;  %3376 = vmatprep.mubr.msk.bf16.mxu0 %vm4367_vm1, %v4366_v35  ;;  %v3674_v33 = vld [vmem:[#allocation11 + $0xf0] ss:$24 sps:$4 sm:$0xff] (!%p3105_p6)  }
  0xf3   : > { %3362 = vmatprep.subr.bf16.mxu0 %v4366_v35  ;;  %807 = vmatmul.mubr.bf16.vlgmr.msra.gmra.mrb[0].mxu1 %v4801_v13 }
  0xf4   : > { %2402 = vmatpush1.bf16.msra.mxu1 (!%p3105_p6), %v3644_v12  ;;  %v3741_v12 = vld [vmem:[#allocation11 + $0xc] ss:$24 sps:$4 sm:$0xff] (!%p3105_p6)  }
  0xf5   : > { %2403 = vmatprep.subr.bf16.mxu1 (!%p3105_p6), %v3646_v14  ;;  %v889_v14 = vlaneseq (!%p3105_p6) }
  0xf6   : > { %3363 = vmatpush3.bf16.msra.mxu0 %v3617_v37  ;;  %v3680_v37 = vld [vmem:[#allocation11 + $0x120] ss:$24 sps:$4 sm:$0xff] (!%p3105_p6)  }
  0xf7   : > { %3364 = vmatprep.subr.bf16.mxu0 %v4366_v35 }
  0xf8   : > { %2404 = vmatpush1.bf16.msra.mxu1 (!%p3105_p6), %v3650_v16 }
  0xf9   : > { %2405 = vmatprep.subr.bf16.mxu1 (!%p3105_p6), %v3652_v18 }
  0xfa   : > { %3365 = vmatpush3.bf16.msra.mxu0 %v3621_v40  ;;  %v3684_v40 = vld [vmem:[#allocation11 + $0x454] ss:$24 sps:$4 sm:$0xff] (!%p3105_p6)  }
  0xfb   : > { %3366 = vmatprep.subr.bf16.mxu0 %v4366_v35 }
  0xfc   : > { %2406 = vmatpush1.bf16.msra.mxu1 (!%p3105_p6), %v3656_v20 }
  0xfd   : > { %2407 = vmatprep.subr.bf16.mxu1 (!%p3105_p6), %v3658_v22 }
  0xfe   : > { %3367 = vmatpush3.bf16.msra.mxu0 %v3625_v41  ;;  %v3686_v41 = vld [vmem:[#allocation11 + $0x150] ss:$24 sps:$4 sm:$0xff] (!%p3105_p6)  }
  0xff   : > { %3368 = vmatprep.subr.bf16.mxu0 %v4366_v35 }
 0x100   : > { %2408 = vmatpush1.bf16.msra.mxu1 (!%p3105_p6), %v3662_v24 }
 0x101   : > { %2409 = vmatprep.subr.bf16.mxu1 (!%p3105_p6), %v3664_v27 }
 0x102   : > { %3369 = vmatpush3.bf16.msra.mxu0 %v3629_v42  ;;  %v3687_v42 = vld [vmem:[#allocation11 + $0x450] ss:$24 sps:$4 sm:$0xff] (!%p3105_p6)  }
 0x103   : > { %3370 = vmatprep.subr.bf16.mxu0 %v4366_v35 }
 0x104   : > { %2410 = vmatpush1.bf16.msra.mxu1 (!%p3105_p6), %v3668_v29 }
 0x105   : > { %2411 = vmatprep.subr.bf16.mxu1 (!%p3105_p6), %v3670_v31 }
 0x106   : > { %3371 = vmatpush3.bf16.msra.mxu0 %v3633_v43  ;;  %v3688_v43 = vld [vmem:[#allocation11 + $0x184] ss:$24 sps:$4 sm:$0xff] (!%p3105_p6)  }
 0x107   : > { %3372 = vmatprep.subr.bf16.mxu0 %v4366_v35 }
 0x108   : > { %2412 = vmatpush1.bf16.msra.mxu1 (!%p3105_p6), %v3674_v33 }
 0x10a   : > { %3373 = vmatpush3.bf16.msra.mxu0 %v3637_v44  ;;  %v3690_v44 = vld [vmem:[#allocation11 + $0x484] ss:$24 sps:$4 sm:$0xff] (!%p3105_p6)  }
 0x10b   : > { %3374 = vmatprep.subr.bf16.mxu0 %v4366_v35  ;;  %v3676_v35 = vld [vmem:[#allocation11 + $0x124] ss:$24 sps:$4 sm:$0xff] (!%p3105_p6)  }
 0x10c   : > { %2413 = vmatprep.subr.bf16.mxu1 (!%p3105_p6), %v3676_v35 }
 0x10d   : > { %2414 = vmatpush1.bf16.msra.mxu1 (!%p3105_p6), %v3680_v37 }
 0x10e   : > { %3375 = vmatpush3.bf16.msra.mxu0 %v3638_v45  ;;  %2415 = vmatprep.subr.bf16.mxu1 (!%p3105_p6), %v3682_v39  ;;  %v3692_v45 = vld [vmem:[#allocation11 + $0x180] ss:$24 sps:$4 sm:$0xff] (!%p3105_p6)  }
 0x10f   : > { %2442 = vmatprep.subr.bf16.mxu0 (!%p3105_p6), %v3642_v11  ;;  %v3735_v11 = vld [vmem:[#allocation11 + $0x5d0] ss:$24 sps:$4 sm:$0xff] (!%p3105_p6)  }
 0x111   : > { %3377 = vmatmul.mubr.bf16.vlgmr.msra.gmra.mrb[4].mxu0 %v4801_v13  ;;  %v3645_v13 = vld [vmem:[#allocation11 + $0x300] ss:$24 sps:$4 sm:$0xff] (!%p3105_p6)   ;;  %2416 = vmatpush1.bf16.msra.mxu1 (!%p3105_p6), %v3686_v41 }
 0x112   : > { %2443 = vmatpush1.bf16.msra.mxu0 (!%p3105_p6), %v3645_v13  ;;  %2417 = vmatprep.subr.bf16.mxu1 (!%p3105_p6), %v3688_v43  ;;  %v3738_v13 = vld [vmem:[#allocation11 + $0x604] ss:$24 sps:$4 sm:$0xff] (!%p3105_p6)   ;;  %v3739_v43 = vld [vmem:[#allocation11 + $0x8] ss:$24 sps:$4 sm:$0xff] (!%p3105_p6)  }
 0x113   : > { %2444 = vmatprep.subr.bf16.mxu0 (!%p3105_p6), %v3648_v15  ;;  %v4838_v15 = vshrl.u32 (!%p3105_p6), %v889_v14, 7  ;;  %v3783_v14 = vld [vmem:[#allocation11 + $0x15c] ss:$24 sps:$4 sm:$0xff] (!%p3105_p6)  }
 0x115   : > { %2418 = vmatpush1.bf16.msra.mxu1 (!%p3105_p6), %v3692_v45  ;;  %v895_v16 = vsub.s32 (!%p3105_p6), 1, %v4838_v15  ;;  %v891_v22 = vsub.s32 (!%p3105_p6), 0, %v4838_v15  ;;  %v3736_v45 = vld [vmem:[#allocation11 + $0x600] ss:$24 sps:$4 sm:$0xff] (!%p3105_p6)  }
 0x116   : > { %2445 = vmatpush1.bf16.msra.mxu0 (!%p3105_p6), %v3651_v17  ;;  %v903_v17 = vsub.s32 (!%p3105_p6), 3, %v4838_v15 }
 0x117   : > { %2446 = vmatprep.subr.bf16.mxu0 (!%p3105_p6), %v3654_v19 }
 0x11a   : > { %2447 = vmatpush1.bf16.msra.mxu0 (!%p3105_p6), %v3657_v21  ;;  %v887_v21 = vld [vmem:[%s5121_s20] sm:$0x1f] (!%p3105_p6) }
 0x11b   : > { %2448 = vmatprep.subr.bf16.mxu0 (!%p3105_p6), %v3660_v23  ;;  %v899_v23 = vsub.s32 (!%p3105_p6), 2, %v4838_v15 }
 0x11d   : > { %v900_v29 = vrot.slane (!%p3105_p6), %v887_v21, %v899_v23 }
 0x11e   : > { %2449 = vmatpush1.bf16.msra.mxu0 (!%p3105_p6), %v3663_v26  ;;  %v904_v26 = vrot.slane (!%p3105_p6), %v887_v21, %v903_v17 }
 0x11f   : > { %2450 = vmatprep.subr.bf16.mxu0 (!%p3105_p6), %v3666_v28  ;;  %v892_v28 = vrot.slane (!%p3105_p6), %v887_v21, %v891_v22 }
 0x122   : > { %2451 = vmatpush1.bf16.msra.mxu0 (!%p3105_p6), %v3669_v30 }
 0x123   : > { %2452 = vmatprep.subr.bf16.mxu0 (!%p3105_p6), %v3672_v32 }
 0x126   : > { %2453 = vmatpush1.bf16.msra.mxu0 (!%p3105_p6), %v3675_v34 }
 0x127   : > { %2454 = vmatprep.subr.bf16.mxu0 (!%p3105_p6), %v3678_v36 }
 0x12a   : > { %2455 = vmatpush1.bf16.msra.mxu0 (!%p3105_p6), %v3681_v38 }
 0x12b   : > { %2456 = vmatprep.subr.bf16.mxu0 (!%p3105_p6), %v3684_v40 }
 0x12e   : > { %2457 = vmatpush1.bf16.msra.mxu0 (!%p3105_p6), %v3687_v42 }
 0x12f   : > { %2458 = vmatprep.subr.bf16.mxu0 (!%p3105_p6), %v3690_v44 }
 0x165   : > { %v468_v47 = vpop.xlane.xlu0 %467 }
 0x166   : > { %v469_v48 = vadd.f32 %v468_v47, %v465_v46  ;;  %v3693_v46 = vld [vmem:[#allocation11 + $0x480] ss:$24 sps:$4 sm:$0xff] (!%p3105_p6)   ;;  %v3694_v47 = vld [vmem:[#allocation11 + $0x1b4] ss:$24 sps:$4 sm:$0xff] (!%p3105_p6)  }
 0x167   : > { %2459 = vmatpush1.bf16.msra.mxu0 (!%p3105_p6), %v3693_v46  ;;  %2419 = vmatprep.subr.bf16.mxu1 (!%p3105_p6), %v3694_v47 }
 0x168   : > { %471 = vst.msk [vmem:[#allocation3] sm:$0xff] %vm470_vm2, %v469_v48  ;;  %v3696_v48 = vld [vmem:[#allocation11 + $0x4b4] ss:$24 sps:$4 sm:$0xff] (!%p3105_p6)  }
 0x169   : > { %2460 = vmatprep.subr.bf16.mxu0 (!%p3105_p6), %v3696_v48  ;;  %v3744_v48 = vld [vmem:[#allocation11 + $0x634] ss:$24 sps:$4 sm:$0xff] (!%p3105_p6)  }
 0x16f   : > { %v869_v7 = vld [vmem:[#allocation3] sm:$0xff] (!%p3105_p6) }
 0x170   : > { %v870_v9 = vmax.f32 (!%p3105_p6), %v869_v7, 1e-24  ;;  %v3730_v7 = vld [vmem:[#allocation11 + $0x2d4] ss:$24 sps:$4 sm:$0xff] (!%p3105_p6)  }
 0x172   : > { %4000 = vrsqrt.f32 (!%p3105_p6), %v870_v9  ;;  %v3732_v9 = vld [vmem:[#allocation11 + $0x5d4] ss:$24 sps:$4 sm:$0xff] (!%p3105_p6)  }
 0x17c   : > { %v4001_v25 = vpop.eup (!%p3105_p6), %4000 }
 0x17d   : > { %879 = vperm.xlu0 (!%p3105_p6), %3639, %v4001_v25   ;;  %v896_v25 = vrot.slane (!%p3105_p6), %v887_v21, %v895_v16 }
 0x1c4   : > { %v767_v51 = vpop.f32.mrb[0].mxu0 }
 0x1c5   : > { %v855_v52 = vadd.f32 %v767_v51, %v472_v49  ;;  %v769_v53 = vpop.f32.mrb[1].mxu0  ;;  %v3698_v49 = vld [vmem:[#allocation11 + $0x1b0] ss:$24 sps:$4 sm:$0xff] (!%p3105_p6)   ;;  %v3700_v51 = vld [vmem:[#allocation11 + $0x1e4] ss:$24 sps:$4 sm:$0xff] (!%p3105_p6)  }
 0x1c6   : > { %v856_v54 = vadd.f32 %v769_v53, %v473_v50  ;;  %v771_v55 = vpop.f32.mrb[2].mxu0  ;;  %v808_v59 = vpop.f32.mrb[0].mxu1  ;;  %v3699_v50 = vld [vmem:[#allocation11 + $0x4b0] ss:$24 sps:$4 sm:$0xff] (!%p3105_p6)   ;;  %2420 = vmatpush1.bf16.msra.mxu1 (!%p3105_p6), %v3698_v49  ;;  %v3704_v53 = vld [vmem:[#allocation11 + $0x1e0] ss:$24 sps:$4 sm:$0xff] (!%p3105_p6)  }
 0x1c7   : > { %860 = vst [vmem:[#allocation2] sm:$0xff] %v855_v52  ;;  %v772_v56 = vpop.f32.mrb[3].mxu0  ;;  %v857_v60 = vadd.f32 %v808_v59, %v474_v57  ;;  %v810_v61 = vpop.f32.mrb[1].mxu1  ;;  %v3702_v52 = vld [vmem:[#allocation11 + $0x4e4] ss:$24 sps:$4 sm:$0xff] (!%p3105_p6)   ;;  %2461 = vmatpush1.bf16.msra.mxu0 (!%p3105_p6), %v3699_v50  ;;  %2421 = vmatprep.subr.bf16.mxu1 (!%p3105_p6), %v3700_v51 }
 0x1c8   : > { %861 = vst [vmem:[#allocation2 + $0x8] sm:$0xff] %v856_v54  ;;  %v858_v62 = vadd.f32 %v810_v61, %v475_v58  ;;  %v812_v63 = vpop.f32.mrb[2].mxu1  ;;  %v3705_v54 = vld [vmem:[#allocation11 + $0x4e0] ss:$24 sps:$4 sm:$0xff] (!%p3105_p6)   ;;  %v3706_v55 = vld [vmem:[#allocation11 + $0x214] ss:$24 sps:$4 sm:$0xff] (!%p3105_p6)   ;;  %2462 = vmatprep.subr.bf16.mxu0 (!%p3105_p6), %v3702_v52 }
 0x1c9   : > { %862 = vst [vmem:[#allocation2 + $0x10] sm:$0xff] %v857_v60  ;;  %v813_v0 = vpop.f32.mrb[3].mxu1  ;;  %v3708_v56 = vld [vmem:[#allocation11 + $0x514] ss:$24 sps:$4 sm:$0xff] (!%p3105_p6)   ;;  %v3710_v57 = vld [vmem:[#allocation11 + $0x210] ss:$24 sps:$4 sm:$0xff] (!%p3105_p6)  }
 0x1ca   : > { %863 = vst [vmem:[#allocation2 + $0x18] sm:$0xff] %v858_v62  ;;  %2422 = vmatpush1.bf16.msra.mxu1 (!%p3105_p6), %v3704_v53  ;;  %v3711_v58 = vld [vmem:[#allocation11 + $0x510] ss:$24 sps:$4 sm:$0xff] (!%p3105_p6)   ;;  %v3712_v59 = vld [vmem:[#allocation11 + $0x244] ss:$24 sps:$4 sm:$0xff] (!%p3105_p6)  }
 0x1cb   : > { %2463 = vmatpush1.bf16.msra.mxu0 (!%p3105_p6), %v3705_v54  ;;  %2423 = vmatprep.subr.bf16.mxu1 (!%p3105_p6), %v3706_v55  ;;  %v3714_v60 = vld [vmem:[#allocation11 + $0x544] ss:$24 sps:$4 sm:$0xff] (!%p3105_p6)   ;;  %v3716_v61 = vld [vmem:[#allocation11 + $0x240] ss:$24 sps:$4 sm:$0xff] (!%p3105_p6)   ;;  %v3718_v63 = vld [vmem:[#allocation11 + $0x274] ss:$24 sps:$4 sm:$0xff] (!%p3105_p6)  }
 0x1cc   : > { %2464 = vmatprep.subr.bf16.mxu0 (!%p3105_p6), %v3708_v56  ;;  %v3717_v62 = vld [vmem:[#allocation11 + $0x540] ss:$24 sps:$4 sm:$0xff] (!%p3105_p6)   ;;  %v3720_v0 = vld [vmem:[#allocation11 + $0x574] ss:$24 sps:$4 sm:$0xff] (!%p3105_p6)   ;;  %v3742_v51 = vld [vmem:[#allocation11 + $0x630] ss:$24 sps:$4 sm:$0xff] (!%p3105_p6)  }
 0x1cd   : > { %v3747_v49 = vld [vmem:[#allocation11 + $0x3c] ss:$24 sps:$4 sm:$0xff] (!%p3105_p6)   ;;  %v3745_v50 = vld [vmem:[#allocation11 + $0x38] ss:$24 sps:$4 sm:$0xff] (!%p3105_p6)   ;;  %v3753_v52 = vld [vmem:[#allocation11 + $0x6c] ss:$24 sps:$4 sm:$0xff] (!%p3105_p6)  }
 0x1ce   : > { %2424 = vmatpush1.bf16.msra.mxu1 (!%p3105_p6), %v3710_v57  ;;  %v872_v18 = vld [vmem:[#allocation2] sm:$0xff] (!%p3105_p6)  ;;  %v3750_v53 = vld [vmem:[#allocation11 + $0x664] ss:$24 sps:$4 sm:$0xff] (!%p3105_p6)   ;;  %v907_v55 = vsub.s32 (!%p3105_p6), 4, %v4838_v15  ;;  %v3748_v56 = vld [vmem:[#allocation11 + $0x660] ss:$24 sps:$4 sm:$0xff] (!%p3105_p6)  }
 0x1cf   : > { %2465 = vmatpush1.bf16.msra.mxu0 (!%p3105_p6), %v3711_v58  ;;  %2425 = vmatprep.subr.bf16.mxu1 (!%p3105_p6), %v3712_v59  ;;  %v873_v19 = vld [vmem:[#allocation2 + $0x8] sm:$0xff] (!%p3105_p6)  ;;  %v3751_v54 = vld [vmem:[#allocation11 + $0x68] ss:$24 sps:$4 sm:$0xff] (!%p3105_p6)  }
 0x1d0   : > { %2466 = vmatprep.subr.bf16.mxu0 (!%p3105_p6), %v3714_v60  ;;  %v874_v20 = vld [vmem:[#allocation2 + $0x10] sm:$0xff] (!%p3105_p6)  ;;  %v3756_v59 = vld [vmem:[#allocation11 + $0x694] ss:$24 sps:$4 sm:$0xff] (!%p3105_p6)  }
 0x1d1   : > { %v875_v24 = vld [vmem:[#allocation2 + $0x18] sm:$0xff] (!%p3105_p6)  ;;  %v3759_v57 = vld [vmem:[#allocation11 + $0x9c] ss:$24 sps:$4 sm:$0xff] (!%p3105_p6)   ;;  %v3757_v60 = vld [vmem:[#allocation11 + $0x98] ss:$24 sps:$4 sm:$0xff] (!%p3105_p6)  }
 0x1d2   : > { %2426 = vmatpush1.bf16.msra.mxu1 (!%p3105_p6), %v3716_v61  ;;  %v908_v61 = vrot.slane (!%p3105_p6), %v887_v21, %v907_v55  ;;  %v3786_v21 = vld [vmem:[#allocation11 + $0x18c] ss:$24 sps:$4 sm:$0xff] (!%p3105_p6)  }
 0x1d3   : > { %2467 = vmatpush1.bf16.msra.mxu0 (!%p3105_p6), %v3717_v62  ;;  %2427 = vmatprep.subr.bf16.mxu1 (!%p3105_p6), %v3718_v63  ;;  %v3754_v63 = vld [vmem:[#allocation11 + $0x690] ss:$24 sps:$4 sm:$0xff] (!%p3105_p6)  }
 0x1d4   : > { %2468 = vmatprep.subr.bf16.mxu0 (!%p3105_p6), %v3720_v0  ;;  %v3765_v0 = vld [vmem:[#allocation11 + $0xcc] ss:$24 sps:$4 sm:$0xff] (!%p3105_p6)  }
 0x1e1   : > { %868 = sbr.rel (%p3105_p6) target bundleno = 956 (0x3bc), region = 68 }
 0x1e4   : > { %v849_v2 = vpop.f32.mrb[4].mxu0 }
 0x1e5   : > { %v859_v3 = vadd.f32 %v849_v2, %v476_v1  ;;  %v3378_v4 = vpop.f32.mrb[5].mxu0  ;;  %v3722_v1 = vld [vmem:[#allocation11 + $0x270] ss:$24 sps:$4 sm:$0xff] (!%p3105_p6)  }
 0x1e6   : > { %v852_v5 = vpop.f32.mrb[6].mxu0  ;;  %v3723_v2 = vld [vmem:[#allocation11 + $0x570] ss:$24 sps:$4 sm:$0xff] (!%p3105_p6)   ;;  %v3726_v4 = vld [vmem:[#allocation11 + $0x5a4] ss:$24 sps:$4 sm:$0xff] (!%p3105_p6)   ;;  %2428 = vmatpush1.bf16.msra.mxu1 (!%p3105_p6), %v3722_v1 }
 0x1e7   : > { %864 = vst [vmem:[#allocation2 + $0x20] sm:$0xff] %v859_v3  ;;  %v3379_v6 = vpop.f32.mrb[7].mxu0  ;;  %v3724_v3 = vld [vmem:[#allocation11 + $0x2a4] ss:$24 sps:$4 sm:$0xff] (!%p3105_p6)   ;;  %v3728_v5 = vld [vmem:[#allocation11 + $0x2a0] ss:$24 sps:$4 sm:$0xff] (!%p3105_p6)   ;;  %2469 = vmatpush1.bf16.msra.mxu0 (!%p3105_p6), %v3723_v2 }
 0x1e8   : > { %v3729_v6 = vld [vmem:[#allocation11 + $0x5a0] ss:$24 sps:$4 sm:$0xff]   ;;  %2429 = vmatprep.subr.bf16.mxu1 %v3724_v3  ;;  %2470 = vmatprep.subr.bf16.mxu0 %v3726_v4  ;;  %v3762_v1 = vld [vmem:[#allocation11 + $0x6c4] ss:$24 sps:$4 sm:$0xff]  }
 0x1e9   : > { %v3763_v2 = vld [vmem:[#allocation11 + $0xc8] ss:$24 sps:$4 sm:$0xff]  }
 0x1ea   : > { %2430 = vmatpush1.bf16.msra.mxu1 %v3728_v5  ;;  %v3760_v4 = vld [vmem:[#allocation11 + $0x6c0] ss:$24 sps:$4 sm:$0xff]   ;;  %v3771_v5 = vld [vmem:[#allocation11 + $0xfc] ss:$24 sps:$4 sm:$0xff]  }
 0x1eb   : > { %2471 = vmatpush1.bf16.msra.mxu0 %v3729_v6  ;;  %2431 = vmatprep.subr.bf16.mxu1 %v3730_v7  ;;  %v3768_v6 = vld [vmem:[#allocation11 + $0x6f4] ss:$24 sps:$4 sm:$0xff]   ;;  %v3769_v7 = vld [vmem:[#allocation11 + $0xf8] ss:$24 sps:$4 sm:$0xff]  }
 0x1ec   : > { %2472 = vmatprep.subr.bf16.mxu0 %v3732_v9  ;;  %v3766_v9 = vld [vmem:[#allocation11 + $0x6f0] ss:$24 sps:$4 sm:$0xff]  }
 0x1ee   : > { %2432 = vmatpush1.bf16.msra.mxu1 %v3734_v10  ;;  %v876_v58 = vld [vmem:[#allocation2 + $0x20] sm:$0xff] }
 0x1ef   : > { %2473 = vmatpush1.bf16.msra.mxu0 %v3735_v11  ;;  %2524 = vmatprep.subr.bf16.mxu1 %v3741_v12  ;;  %v3777_v10 = vld [vmem:[#allocation11 + $0x12c] ss:$24 sps:$4 sm:$0xff]   ;;  %v3775_v12 = vld [vmem:[#allocation11 + $0x128] ss:$24 sps:$4 sm:$0xff]  }
 0x1f0   : > { %2483 = vmatprep.subr.bf16.mxu0 %v3738_v13  ;;  %v3774_v11 = vld [vmem:[#allocation11 + $0x724] ss:$24 sps:$4 sm:$0xff]   ;;  %v3772_v13 = vld [vmem:[#allocation11 + $0x720] ss:$24 sps:$4 sm:$0xff]  }
 0x1fc   : > { %v880_v27 = vpop.permute.xlu0 %879 }
 0x1fd   : > { %v882_v30 = vmul.f32 %v880_v27, %v872_v18  ;;  %v883_v31 = vmul.f32 %v880_v27, %v873_v19  ;;  %v884_v32 = vmul.f32 %v880_v27, %v874_v20  ;;  %v885_v33 = vmul.f32 %v880_v27, %v875_v24  ;;  %v3780_v18 = vld [vmem:[#allocation11 + $0x754] ss:$24 sps:$4 sm:$0xff]   ;;  %v3781_v19 = vld [vmem:[#allocation11 + $0x158] ss:$24 sps:$4 sm:$0xff]  }
 0x1fe   : > { %v886_v62 = vmul.f32 %v880_v27, %v876_v58  ;;  %v3778_v20 = vld [vmem:[#allocation11 + $0x750] ss:$24 sps:$4 sm:$0xff]   ;;  %v3789_v24 = vld [vmem:[#allocation11 + $0x14] ss:$24 sps:$4 sm:$0xff]   ;;  %v3831_v58 = vld [vmem:[#allocation11 + $0x164] ss:$24 sps:$4 sm:$0xff]  }
 0x1ff   : > { %v915_v34 = vadd.f32 %v896_v25, %v883_v31  ;;  %v917_v35 = vadd.f32 %v904_v26, %v885_v33  ;;  %v914_v36 = vadd.f32 %v892_v28, %v882_v30  ;;  %v916_v37 = vadd.f32 %v900_v29, %v884_v32  ;;  %v3784_v26 = vld [vmem:[#allocation11 + $0x188] ss:$24 sps:$4 sm:$0xff]   ;;  %v3792_v29 = vld [vmem:[#allocation11 + $0x1bc] ss:$24 sps:$4 sm:$0xff]   ;;  %v3790_v31 = vld [vmem:[#allocation11 + $0x1b8] ss:$24 sps:$4 sm:$0xff]  }
 0x200   : > { %v918_v3 = vadd.f32 %v908_v61, %v886_v62  ;;  %v3787_v27 = vld [vmem:[#allocation11 + $0x10] ss:$24 sps:$4 sm:$0xff]   ;;  %v3795_v30 = vld [vmem:[#allocation11 + $0x44] ss:$24 sps:$4 sm:$0xff]   ;;  %v3793_v32 = vld [vmem:[#allocation11 + $0x40] ss:$24 sps:$4 sm:$0xff]  }
 0x201   : > { %4002 = vtanh.f32 %v915_v34  ;;  %v3798_v33 = vld [vmem:[#allocation11 + $0x1ec] ss:$24 sps:$4 sm:$0xff]  }
 0x202   : > { %4004 = vtanh.f32 %v917_v35  ;;  %v3801_v34 = vld [vmem:[#allocation11 + $0x74] ss:$24 sps:$4 sm:$0xff]   ;;  %v3796_v35 = vld [vmem:[#allocation11 + $0x1e8] ss:$24 sps:$4 sm:$0xff]  }
 0x203   : > { %4006 = vtanh.f32 %v914_v36  ;;  %v3799_v36 = vld [vmem:[#allocation11 + $0x70] ss:$24 sps:$4 sm:$0xff]   ;;  %v3834_v61 = vld [vmem:[#allocation11 + $0x30c] ss:$24 sps:$4 sm:$0xff]  }
 0x204   : > { %4008 = vtanh.f32 %v916_v37  ;;  %v3804_v37 = vld [vmem:[#allocation11 + $0x21c] ss:$24 sps:$4 sm:$0xff]  }
 0x205   : > { %4010 = vtanh.f32 %v918_v3  ;;  %v3837_v62 = vld [vmem:[#allocation11 + $0x194] ss:$24 sps:$4 sm:$0xff]   ;;  %v3838_v3 = vld [vmem:[#allocation11 + $0x338] ss:$24 sps:$4 sm:$0xff]  }
 0x20b   : > { %v4003_v38 = vpop.eup %4002 }
 0x20c   : > { %v4855_v39 = vpack.c.bf16 %v4003_v38, %v4003_v38  ;;  %v4005_v40 = vpop.eup %4004  ;;  %v3807_v38 = vld [vmem:[#allocation11 + $0xa4] ss:$24 sps:$4 sm:$0xff]  }
 0x20d   : > { %v4007_v41 = vpop.eup %4006  ;;  %v4858_v42 = vpack.c.bf16 %v4005_v40, %v4005_v40  ;;  %v3802_v40 = vld [vmem:[#allocation11 + $0x218] ss:$24 sps:$4 sm:$0xff]  }
 0x20e   : > { %2433 = vmatprep.mubr.bf16.mxu1 %v4855_v39  ;;  %v4009_v44 = vpop.eup %4008  ;;  %v4860_v46 = vpack.c.bf16 %v4007_v41, %v4007_v41  ;;  %v3805_v41 = vld [vmem:[#allocation11 + $0xa0] ss:$24 sps:$4 sm:$0xff]  }
 0x20f   : > { %2474 = vmatprep.mubr.bf16.mxu0 %v4858_v42  ;;  %v4863_v47 = vpack.c.bf16 %v4009_v44, %v4009_v44  ;;  %v4011_v25 = vpop.eup %4010  ;;  %v3808_v44 = vld [vmem:[#allocation11 + $0x248] ss:$24 sps:$4 sm:$0xff]  }
 0x210   : > { %2434 = vmatmul.mubr.bf16.vlgmr.msra.gmra.mrb[0].mxu1 %v4860_v46  ;;  %v4872_v28 = vpack.c.bf16 %v4011_v25, %v4011_v25  ;;  %v3862_v25 = vld [vmem:[#allocation11 + $0x3f8] ss:$24 sps:$4 sm:$0xff]  }
 0x211   : > { %2475 = vmatmul.mubr.bf16.vlgmr.msra.gmra.mrb[0].mxu0 %v4863_v47  ;;  %2525 = vmatpush1.bf16.msra.mxu1 %v3739_v43  ;;  %v3810_v43 = vld [vmem:[#allocation11 + $0x24c] ss:$24 sps:$4 sm:$0xff]  }
 0x212   : > { %2484 = vmatpush1.bf16.msra.mxu0 %v3736_v45  ;;  %2556 = vmatprep.mubr.bf16.mxu1 %v4855_v39  ;;  %v3811_v45 = vld [vmem:[#allocation11 + $0xd0] ss:$24 sps:$4 sm:$0xff]  }
 0x213   : > { %2485 = vmatprep.subr.bf16.mxu0 %v3744_v48  ;;  %2526 = vmatprep.subr.bf16.mxu1 %v3747_v49  ;;  %v3816_v48 = vld [vmem:[#allocation11 + $0x27c] ss:$24 sps:$4 sm:$0xff]  }
 0x214   : > { %2515 = vmatprep.mubr.bf16.mxu0 %v4368_v8  ;;  %v3819_v49 = vld [vmem:[#allocation11 + $0x104] ss:$24 sps:$4 sm:$0xff]  }
 0x215   : > { %2527 = vmatpush1.bf16.msra.mxu1 %v3745_v50  ;;  %v3814_v50 = vld [vmem:[#allocation11 + $0x278] ss:$24 sps:$4 sm:$0xff]  }
 0x216   : > { %2486 = vmatpush1.bf16.msra.mxu0 %v3742_v51  ;;  %2528 = vmatprep.subr.bf16.mxu1 %v3753_v52  ;;  %v3817_v51 = vld [vmem:[#allocation11 + $0x100] ss:$24 sps:$4 sm:$0xff]   ;;  %v3822_v52 = vld [vmem:[#allocation11 + $0x2ac] ss:$24 sps:$4 sm:$0xff]  }
 0x217   : > { %2487 = vmatprep.subr.bf16.mxu0 %v3750_v53  ;;  %v3825_v53 = vld [vmem:[#allocation11 + $0x134] ss:$24 sps:$4 sm:$0xff]  }
 0x219   : > { %2529 = vmatpush1.bf16.msra.mxu1 %v3751_v54  ;;  %v3820_v54 = vld [vmem:[#allocation11 + $0x2a8] ss:$24 sps:$4 sm:$0xff]  }
 0x21a   : > { %2488 = vmatpush1.bf16.msra.mxu0 %v3748_v56  ;;  %2530 = vmatprep.subr.bf16.mxu1 %v3759_v57  ;;  %v3823_v56 = vld [vmem:[#allocation11 + $0x130] ss:$24 sps:$4 sm:$0xff]   ;;  %v3828_v57 = vld [vmem:[#allocation11 + $0x2dc] ss:$24 sps:$4 sm:$0xff]  }
 0x21b   : > { %2489 = vmatprep.subr.bf16.mxu0 %v3756_v59  ;;  %v3826_v59 = vld [vmem:[#allocation11 + $0x2d8] ss:$24 sps:$4 sm:$0xff]  }
 0x21d   : > { %2531 = vmatpush1.bf16.msra.mxu1 %v3757_v60  ;;  %v3829_v60 = vld [vmem:[#allocation11 + $0x160] ss:$24 sps:$4 sm:$0xff]  }
 0x21e   : > { %2490 = vmatpush1.bf16.msra.mxu0 %v3754_v63  ;;  %2532 = vmatprep.subr.bf16.mxu1 %v3765_v0  ;;  %v3832_v63 = vld [vmem:[#allocation11 + $0x308] ss:$24 sps:$4 sm:$0xff]  }
 0x21f   : > { %2491 = vmatprep.subr.bf16.mxu0 %v3762_v1  ;;  %v3835_v0 = vld [vmem:[#allocation11 + $0x190] ss:$24 sps:$4 sm:$0xff]   ;;  %v3840_v1 = vld [vmem:[#allocation11 + $0x33c] ss:$24 sps:$4 sm:$0xff]  }
 0x221   : > { %2533 = vmatpush1.bf16.msra.mxu1 %v3763_v2  ;;  %v3843_v2 = vld [vmem:[#allocation11 + $0x1c4] ss:$24 sps:$4 sm:$0xff]  }
 0x222   : > { %2492 = vmatpush1.bf16.msra.mxu0 %v3760_v4  ;;  %2534 = vmatprep.subr.bf16.mxu1 %v3771_v5  ;;  %v3841_v4 = vld [vmem:[#allocation11 + $0x1c0] ss:$24 sps:$4 sm:$0xff]   ;;  %v3846_v5 = vld [vmem:[#allocation11 + $0x36c] ss:$24 sps:$4 sm:$0xff]  }
 0x223   : > { %2493 = vmatprep.subr.bf16.mxu0 %v3768_v6  ;;  %v3849_v6 = vld [vmem:[#allocation11 + $0x1f4] ss:$24 sps:$4 sm:$0xff]  }
 0x225   : > { %2535 = vmatpush1.bf16.msra.mxu1 %v3769_v7  ;;  %v3844_v7 = vld [vmem:[#allocation11 + $0x368] ss:$24 sps:$4 sm:$0xff]  }
 0x226   : > { %2494 = vmatpush1.bf16.msra.mxu0 %v3766_v9  ;;  %2536 = vmatprep.subr.bf16.mxu1 %v3777_v10  ;;  %v3847_v9 = vld [vmem:[#allocation11 + $0x1f0] ss:$24 sps:$4 sm:$0xff]   ;;  %v3852_v10 = vld [vmem:[#allocation11 + $0x39c] ss:$24 sps:$4 sm:$0xff]  }
 0x227   : > { %2495 = vmatprep.subr.bf16.mxu0 %v3774_v11  ;;  %v3855_v11 = vld [vmem:[#allocation11 + $0x224] ss:$24 sps:$4 sm:$0xff]  }
 0x229   : > { %2537 = vmatpush1.bf16.msra.mxu1 %v3775_v12  ;;  %v3850_v12 = vld [vmem:[#allocation11 + $0x398] ss:$24 sps:$4 sm:$0xff]  }
 0x22a   : > { %2496 = vmatpush1.bf16.msra.mxu0 %v3772_v13  ;;  %2538 = vmatprep.subr.bf16.mxu1 %v3783_v14  ;;  %v3853_v13 = vld [vmem:[#allocation11 + $0x220] ss:$24 sps:$4 sm:$0xff]   ;;  %v3858_v14 = vld [vmem:[#allocation11 + $0x3cc] ss:$24 sps:$4 sm:$0xff]  }
 0x22b   : > { %2497 = vmatprep.subr.bf16.mxu0 %v3780_v18  ;;  %v3861_v18 = vld [vmem:[#allocation11 + $0x254] ss:$24 sps:$4 sm:$0xff]  }
 0x22d   : > { %2539 = vmatpush1.bf16.msra.mxu1 %v3781_v19  ;;  %v3856_v19 = vld [vmem:[#allocation11 + $0x3c8] ss:$24 sps:$4 sm:$0xff]  }
 0x22e   : > { %2498 = vmatpush1.bf16.msra.mxu0 %v3778_v20  ;;  %2540 = vmatprep.subr.bf16.mxu1 %v3786_v21  ;;  %v3859_v20 = vld [vmem:[#allocation11 + $0x250] ss:$24 sps:$4 sm:$0xff]   ;;  %v3864_v21 = vld [vmem:[#allocation11 + $0x3fc] ss:$24 sps:$4 sm:$0xff]  }
 0x22f   : > { %2647 = vmatprep.subr.bf16.mxu0 %v3789_v24  ;;  %v3867_v24 = vld [vmem:[#allocation11 + $0x284] ss:$24 sps:$4 sm:$0xff]  }
 0x231   : > { %2516 = vmatmul.mubr.bf16.vlgmr.msra.gmra.mrb[0].mxu0 %v4872_v28  ;;  %2541 = vmatpush1.bf16.msra.mxu1 %v3784_v26  ;;  %v3865_v26 = vld [vmem:[#allocation11 + $0x280] ss:$24 sps:$4 sm:$0xff]  }
 0x232   : > { %2648 = vmatpush1.bf16.msra.mxu0 %v3787_v27  ;;  %2679 = vmatprep.mubr.bf16.mxu0 %v4855_v39  ;;  %v3813_v39 = vld [vmem:[#allocation11 + $0xd4] ss:$24 sps:$4 sm:$0xff]  }
 0x233   : > { %2542 = vmatprep.subr.bf16.mxu1 %v3792_v29  ;;  %2649 = vmatprep.subr.bf16.mxu0 %v3795_v30  ;;  %v3870_v27 = vld [vmem:[#allocation11 + $0x42c] ss:$24 sps:$4 sm:$0xff]   ;;  %v3868_v30 = vld [vmem:[#allocation11 + $0x428] ss:$24 sps:$4 sm:$0xff]  }
 0x234   : > { %v3873_v29 = vld [vmem:[#allocation11 + $0x2b4] ss:$24 sps:$4 sm:$0xff]  }
 0x235   : > { %2543 = vmatpush1.bf16.msra.mxu1 %v3790_v31  ;;  %v3871_v31 = vld [vmem:[#allocation11 + $0x2b0] ss:$24 sps:$4 sm:$0xff]  }
 0x236   : > { %2650 = vmatpush1.bf16.msra.mxu0 %v3793_v32  ;;  %2544 = vmatprep.subr.bf16.mxu1 %v3798_v33  ;;  %v3876_v32 = vld [vmem:[#allocation11 + $0x45c] ss:$24 sps:$4 sm:$0xff]  }
 0x237   : > { %2651 = vmatprep.subr.bf16.mxu0 %v3801_v34  ;;  %v3879_v33 = vld [vmem:[#allocation11 + $0x2e4] ss:$24 sps:$4 sm:$0xff]   ;;  %v3874_v34 = vld [vmem:[#allocation11 + $0x458] ss:$24 sps:$4 sm:$0xff]  }
 0x239   : > { %2545 = vmatpush1.bf16.msra.mxu1 %v3796_v35  ;;  %v3877_v35 = vld [vmem:[#allocation11 + $0x2e0] ss:$24 sps:$4 sm:$0xff]  }
 0x23a   : > { %2652 = vmatpush1.bf16.msra.mxu0 %v3799_v36  ;;  %2546 = vmatprep.subr.bf16.mxu1 %v3804_v37  ;;  %v3882_v36 = vld [vmem:[#allocation11 + $0x48c] ss:$24 sps:$4 sm:$0xff]  }
 0x23b   : > { %2653 = vmatprep.subr.bf16.mxu0 %v3807_v38  ;;  %v3885_v37 = vld [vmem:[#allocation11 + $0x314] ss:$24 sps:$4 sm:$0xff]   ;;  %v3880_v38 = vld [vmem:[#allocation11 + $0x488] ss:$24 sps:$4 sm:$0xff]  }
 0x23d   : > { %2547 = vmatpush1.bf16.msra.mxu1 %v3802_v40  ;;  %v3883_v40 = vld [vmem:[#allocation11 + $0x310] ss:$24 sps:$4 sm:$0xff]  }
 0x23e   : > { %2654 = vmatpush1.bf16.msra.mxu0 %v3805_v41  ;;  %2548 = vmatprep.subr.bf16.mxu1 %v3810_v43  ;;  %v3888_v41 = vld [vmem:[#allocation11 + $0x4bc] ss:$24 sps:$4 sm:$0xff]  }
 0x23f   : > { %2655 = vmatprep.subr.bf16.mxu0 %v3813_v39  ;;  %v3891_v43 = vld [vmem:[#allocation11 + $0x344] ss:$24 sps:$4 sm:$0xff]   ;;  %v3886_v39 = vld [vmem:[#allocation11 + $0x4b8] ss:$24 sps:$4 sm:$0xff]  }
 0x241   : > { %2549 = vmatpush1.bf16.msra.mxu1 %v3808_v44  ;;  %v3889_v44 = vld [vmem:[#allocation11 + $0x340] ss:$24 sps:$4 sm:$0xff]  }
 0x242   : > { %2656 = vmatpush1.bf16.msra.mxu0 %v3811_v45  ;;  %2550 = vmatprep.subr.bf16.mxu1 %v3816_v48  ;;  %v3894_v45 = vld [vmem:[#allocation11 + $0x4ec] ss:$24 sps:$4 sm:$0xff]  }
 0x243   : > { %2657 = vmatprep.subr.bf16.mxu0 %v3819_v49  ;;  %v3897_v48 = vld [vmem:[#allocation11 + $0x374] ss:$24 sps:$4 sm:$0xff]   ;;  %v3892_v49 = vld [vmem:[#allocation11 + $0x4e8] ss:$24 sps:$4 sm:$0xff]  }
 0x245   : > { %2551 = vmatpush1.bf16.msra.mxu1 %v3814_v50  ;;  %v3895_v50 = vld [vmem:[#allocation11 + $0x370] ss:$24 sps:$4 sm:$0xff]  }
 0x246   : > { %2658 = vmatpush1.bf16.msra.mxu0 %v3817_v51  ;;  %2552 = vmatprep.subr.bf16.mxu1 %v3822_v52  ;;  %v3900_v51 = vld [vmem:[#allocation11 + $0x51c] ss:$24 sps:$4 sm:$0xff]  }
 0x247   : > { %2659 = vmatprep.subr.bf16.mxu0 %v3825_v53  ;;  %v3903_v52 = vld [vmem:[#allocation11 + $0x3a4] ss:$24 sps:$4 sm:$0xff]   ;;  %v3901_v53 = vld [vmem:[#allocation11 + $0x3a0] ss:$24 sps:$4 sm:$0xff]  }
 0x249   : > { %2553 = vmatpush1.bf16.msra.mxu1 %v3820_v54  ;;  %v3906_v54 = vld [vmem:[#allocation11 + $0x54c] ss:$24 sps:$4 sm:$0xff]  }
 0x24a   : > { %2660 = vmatpush1.bf16.msra.mxu0 %v3823_v56  ;;  %2554 = vmatprep.subr.bf16.mxu1 %v3828_v57  ;;  %v3904_v56 = vld [vmem:[#allocation11 + $0x548] ss:$24 sps:$4 sm:$0xff]  }
 0x24b   : > { %2661 = vmatprep.subr.bf16.mxu0 %v3831_v58  ;;  %v3907_v57 = vld [vmem:[#allocation11 + $0x3d0] ss:$24 sps:$4 sm:$0xff]   ;;  %v3912_v58 = vld [vmem:[#allocation11 + $0x57c] ss:$24 sps:$4 sm:$0xff]  }
 0x24d   : > { %2555 = vmatpush1.bf16.msra.mxu1 %v3826_v59  ;;  %v3915_v59 = vld [vmem:[#allocation11 + $0x404] ss:$24 sps:$4 sm:$0xff]  }
 0x24e   : > { %2662 = vmatpush1.bf16.msra.mxu0 %v3829_v60  ;;  %2565 = vmatprep.subr.bf16.mxu1 %v3834_v61  ;;  %v3910_v60 = vld [vmem:[#allocation11 + $0x578] ss:$24 sps:$4 sm:$0xff]  }
 0x24f   : > { %2663 = vmatprep.subr.bf16.mxu0 %v3837_v62  ;;  %v3913_v61 = vld [vmem:[#allocation11 + $0x400] ss:$24 sps:$4 sm:$0xff]   ;;  %v3918_v62 = vld [vmem:[#allocation11 + $0x5ac] ss:$24 sps:$4 sm:$0xff]  }
 0x250   : > { %2557 = vmatmul.mubr.bf16.vlgmr.msra.gmra.mrb[4].mxu1 %v4860_v46 }
 0x251   : > { %2566 = vmatpush1.bf16.msra.mxu1 %v3832_v63  ;;  %2597 = vmatprep.mubr.bf16.mxu1 %v4858_v42  ;;  %v3921_v63 = vld [vmem:[#allocation11 + $0x434] ss:$24 sps:$4 sm:$0xff]  }
 0x252   : > { %2664 = vmatpush1.bf16.msra.mxu0 %v3835_v0  ;;  %2567 = vmatprep.subr.bf16.mxu1 %v3840_v1  ;;  %v3916_v0 = vld [vmem:[#allocation11 + $0x5a8] ss:$24 sps:$4 sm:$0xff]  }
 0x253   : > { %2665 = vmatprep.subr.bf16.mxu0 %v3843_v2  ;;  %v3919_v1 = vld [vmem:[#allocation11 + $0x430] ss:$24 sps:$4 sm:$0xff]   ;;  %v3924_v2 = vld [vmem:[#allocation11 + $0x5dc] ss:$24 sps:$4 sm:$0xff]  }
 0x255   : > { %2568 = vmatpush1.bf16.msra.mxu1 %v3838_v3  ;;  %v3927_v3 = vld [vmem:[#allocation11 + $0x464] ss:$24 sps:$4 sm:$0xff]  }
 0x256   : > { %2666 = vmatpush1.bf16.msra.mxu0 %v3841_v4  ;;  %2569 = vmatprep.subr.bf16.mxu1 %v3846_v5  ;;  %v3922_v4 = vld [vmem:[#allocation11 + $0x5d8] ss:$24 sps:$4 sm:$0xff]  }
 0x257   : > { %2667 = vmatprep.subr.bf16.mxu0 %v3849_v6  ;;  %v3925_v5 = vld [vmem:[#allocation11 + $0x460] ss:$24 sps:$4 sm:$0xff]   ;;  %v3930_v6 = vld [vmem:[#allocation11 + $0x60c] ss:$24 sps:$4 sm:$0xff]  }
 0x259   : > { %2570 = vmatpush1.bf16.msra.mxu1 %v3844_v7  ;;  %v3933_v7 = vld [vmem:[#allocation11 + $0x494] ss:$24 sps:$4 sm:$0xff]  }
 0x25a   : > { %2668 = vmatpush1.bf16.msra.mxu0 %v3847_v9  ;;  %2571 = vmatprep.subr.bf16.mxu1 %v3852_v10  ;;  %v3928_v9 = vld [vmem:[#allocation11 + $0x608] ss:$24 sps:$4 sm:$0xff]  }
 0x25b   : > { %2669 = vmatprep.subr.bf16.mxu0 %v3855_v11  ;;  %v3931_v10 = vld [vmem:[#allocation11 + $0x490] ss:$24 sps:$4 sm:$0xff]   ;;  %v3936_v11 = vld [vmem:[#allocation11 + $0x63c] ss:$24 sps:$4 sm:$0xff]  }
 0x25d   : > { %2572 = vmatpush1.bf16.msra.mxu1 %v3850_v12  ;;  %v3939_v12 = vld [vmem:[#allocation11 + $0x4c4] ss:$24 sps:$4 sm:$0xff]  }
 0x25e   : > { %2670 = vmatpush1.bf16.msra.mxu0 %v3853_v13  ;;  %2573 = vmatprep.subr.bf16.mxu1 %v3858_v14  ;;  %v3934_v13 = vld [vmem:[#allocation11 + $0x638] ss:$24 sps:$4 sm:$0xff]  }
 0x25f   : > { %2671 = vmatprep.subr.bf16.mxu0 %v3861_v18  ;;  %v3937_v14 = vld [vmem:[#allocation11 + $0x4c0] ss:$24 sps:$4 sm:$0xff]   ;;  %v3942_v18 = vld [vmem:[#allocation11 + $0x66c] ss:$24 sps:$4 sm:$0xff]  }
 0x261   : > { %2574 = vmatpush1.bf16.msra.mxu1 %v3856_v19  ;;  %v3945_v19 = vld [vmem:[#allocation11 + $0x4f4] ss:$24 sps:$4 sm:$0xff]  }
 0x262   : > { %2672 = vmatpush1.bf16.msra.mxu0 %v3859_v20  ;;  %2575 = vmatprep.subr.bf16.mxu1 %v3864_v21  ;;  %v3940_v20 = vld [vmem:[#allocation11 + $0x668] ss:$24 sps:$4 sm:$0xff]  }
 0x263   : > { %2673 = vmatprep.subr.bf16.mxu0 %v3867_v24  ;;  %v3943_v21 = vld [vmem:[#allocation11 + $0x4f0] ss:$24 sps:$4 sm:$0xff]   ;;  %v3948_v24 = vld [vmem:[#allocation11 + $0x69c] ss:$24 sps:$4 sm:$0xff]  }
 0x265   : > { %2576 = vmatpush1.bf16.msra.mxu1 %v3862_v25  ;;  %v3951_v25 = vld [vmem:[#allocation11 + $0x524] ss:$24 sps:$4 sm:$0xff]  }
 0x266   : > { %2674 = vmatpush1.bf16.msra.mxu0 %v3865_v26  ;;  %2577 = vmatprep.subr.bf16.mxu1 %v3870_v27  ;;  %v3946_v26 = vld [vmem:[#allocation11 + $0x698] ss:$24 sps:$4 sm:$0xff]  }
 0x267   : > { %2675 = vmatprep.subr.bf16.mxu0 %v3873_v29  ;;  %v3949_v27 = vld [vmem:[#allocation11 + $0x520] ss:$24 sps:$4 sm:$0xff]   ;;  %v3954_v29 = vld [vmem:[#allocation11 + $0x6cc] ss:$24 sps:$4 sm:$0xff]  }
 0x269   : > { %2578 = vmatpush1.bf16.msra.mxu1 %v3868_v30  ;;  %v3957_v30 = vld [vmem:[#allocation11 + $0x554] ss:$24 sps:$4 sm:$0xff]  }
 0x26a   : > { %2676 = vmatpush1.bf16.msra.mxu0 %v3871_v31  ;;  %2579 = vmatprep.subr.bf16.mxu1 %v3876_v32  ;;  %v3952_v31 = vld [vmem:[#allocation11 + $0x6c8] ss:$24 sps:$4 sm:$0xff]  }
 0x26b   : > { %2677 = vmatprep.subr.bf16.mxu0 %v3879_v33  ;;  %v3955_v32 = vld [vmem:[#allocation11 + $0x550] ss:$24 sps:$4 sm:$0xff]   ;;  %v3960_v33 = vld [vmem:[#allocation11 + $0x6fc] ss:$24 sps:$4 sm:$0xff]  }
 0x26d   : > { %2580 = vmatpush1.bf16.msra.mxu1 %v3874_v34  ;;  %v3963_v34 = vld [vmem:[#allocation11 + $0x584] ss:$24 sps:$4 sm:$0xff]  }
 0x26e   : > { %2678 = vmatpush1.bf16.msra.mxu0 %v3877_v35  ;;  %2581 = vmatprep.subr.bf16.mxu1 %v3882_v36  ;;  %v3958_v35 = vld [vmem:[#allocation11 + $0x6f8] ss:$24 sps:$4 sm:$0xff]  }
 0x26f   : > { %2688 = vmatprep.subr.bf16.mxu0 %v3885_v37  ;;  %v3961_v36 = vld [vmem:[#allocation11 + $0x580] ss:$24 sps:$4 sm:$0xff]   ;;  %v3966_v37 = vld [vmem:[#allocation11 + $0x72c] ss:$24 sps:$4 sm:$0xff]  }
 0x271   : > { %2680 = vmatmul.mubr.bf16.vlgmr.msra.gmra.mrb[4].mxu0 %v4860_v46  ;;  %2582 = vmatpush1.bf16.msra.mxu1 %v3880_v38  ;;  %v3898_v46 = vld [vmem:[#allocation11 + $0x518] ss:$24 sps:$4 sm:$0xff]   ;;  %v3969_v38 = vld [vmem:[#allocation11 + $0x5b4] ss:$24 sps:$4 sm:$0xff]  }
 0x272   : > { %2689 = vmatpush1.bf16.msra.mxu0 %v3883_v40  ;;  %2720 = vmatprep.mubr.bf16.mxu0 %v4858_v42  ;;  %v3909_v42 = vld [vmem:[#allocation11 + $0x3d4] ss:$24 sps:$4 sm:$0xff]   ;;  %v3964_v40 = vld [vmem:[#allocation11 + $0x728] ss:$24 sps:$4 sm:$0xff]  }
 0x273   : > { %2583 = vmatprep.subr.bf16.mxu1 %v3888_v41  ;;  %2690 = vmatprep.subr.bf16.mxu0 %v3891_v43  ;;  %v3967_v41 = vld [vmem:[#allocation11 + $0x5b0] ss:$24 sps:$4 sm:$0xff]   ;;  %v3972_v43 = vld [vmem:[#allocation11 + $0x75c] ss:$24 sps:$4 sm:$0xff]  }
 0x275   : > { %2584 = vmatpush1.bf16.msra.mxu1 %v3886_v39  ;;  %v3975_v39 = vld [vmem:[#allocation11 + $0x5e4] ss:$24 sps:$4 sm:$0xff]  }
 0x276   : > { %2691 = vmatpush1.bf16.msra.mxu0 %v3889_v44  ;;  %2585 = vmatprep.subr.bf16.mxu1 %v3894_v45  ;;  %v3970_v44 = vld [vmem:[#allocation11 + $0x758] ss:$24 sps:$4 sm:$0xff]  }
 0x277   : > { %2692 = vmatprep.subr.bf16.mxu0 %v3897_v48  ;;  %v3973_v45 = vld [vmem:[#allocation11 + $0x5e0] ss:$24 sps:$4 sm:$0xff]   ;;  %v3978_v48 = vld [vmem:[#allocation11 + $0x614] ss:$24 sps:$4 sm:$0xff]  }
 0x279   : > { %2586 = vmatpush1.bf16.msra.mxu1 %v3892_v49  ;;  %v3976_v49 = vld [vmem:[#allocation11 + $0x610] ss:$24 sps:$4 sm:$0xff]  }
 0x27a   : > { %2693 = vmatpush1.bf16.msra.mxu0 %v3895_v50  ;;  %2587 = vmatprep.subr.bf16.mxu1 %v3900_v51  ;;  %v3981_v50 = vld [vmem:[#allocation11 + $0x644] ss:$24 sps:$4 sm:$0xff]   ;;  %v3979_v51 = vld [vmem:[#allocation11 + $0x640] ss:$24 sps:$4 sm:$0xff]  }
 0x27b   : > { %2694 = vmatprep.subr.bf16.mxu0 %v3903_v52  ;;  %v3984_v52 = vld [vmem:[#allocation11 + $0x674] ss:$24 sps:$4 sm:$0xff]  }
 0x27d   : > { %2588 = vmatpush1.bf16.msra.mxu1 %v3898_v46  ;;  %v3982_v46 = vld [vmem:[#allocation11 + $0x670] ss:$24 sps:$4 sm:$0xff]  }
 0x27e   : > { %2695 = vmatpush1.bf16.msra.mxu0 %v3901_v53  ;;  %2589 = vmatprep.subr.bf16.mxu1 %v3906_v54  ;;  %v3987_v53 = vld [vmem:[#allocation11 + $0x6a4] ss:$24 sps:$4 sm:$0xff]   ;;  %v3985_v54 = vld [vmem:[#allocation11 + $0x6a0] ss:$24 sps:$4 sm:$0xff]  }
 0x27f   : > { %2696 = vmatprep.subr.bf16.mxu0 %v3909_v42  ;;  %v3990_v42 = vld [vmem:[#allocation11 + $0x6d4] ss:$24 sps:$4 sm:$0xff]  }
 0x281   : > { %2590 = vmatpush1.bf16.msra.mxu1 %v3904_v56  ;;  %v3988_v56 = vld [vmem:[#allocation11 + $0x6d0] ss:$24 sps:$4 sm:$0xff]  }
 0x282   : > { %2697 = vmatpush1.bf16.msra.mxu0 %v3907_v57  ;;  %2591 = vmatprep.subr.bf16.mxu1 %v3912_v58  ;;  %v3993_v57 = vld [vmem:[#allocation11 + $0x704] ss:$24 sps:$4 sm:$0xff]   ;;  %v3996_v58 = vld [vmem:[#allocation11 + $0x734] ss:$24 sps:$4 sm:$0xff]  }
 0x283   : > { %2698 = vmatprep.subr.bf16.mxu0 %v3915_v59  ;;  %v3999_v59 = vld [vmem:[#allocation11 + $0x764] ss:$24 sps:$4 sm:$0xff]  }
 0x285   : > { %2592 = vmatpush1.bf16.msra.mxu1 %v3910_v60  ;;  %v3997_v60 = vld [vmem:[#allocation11 + $0x760] ss:$24 sps:$4 sm:$0xff]  }
 0x286   : > { %2699 = vmatpush1.bf16.msra.mxu0 %v3913_v61  ;;  %2593 = vmatprep.subr.bf16.mxu1 %v3918_v62 }
 0x287   : > { %2700 = vmatprep.subr.bf16.mxu0 %v3921_v63 }
 0x289   : > { %2594 = vmatpush1.bf16.msra.mxu1 %v3916_v0 }
 0x28a   : > { %2701 = vmatpush1.bf16.msra.mxu0 %v3919_v1  ;;  %2595 = vmatprep.subr.bf16.mxu1 %v3924_v2  ;;  %v1169_v1 = vld [vmem:[%s5122_s7] sm:$0x3f] }
 0x28b   : > { %2702 = vmatprep.subr.bf16.mxu0 %v3927_v3  ;;  %v1174_v2 = vrot.slane %v1169_v1, %v891_v22  ;;  %v1178_v3 = vrot.slane %v1169_v1, %v895_v16  ;;  %v1186_v22 = vrot.slane %v1169_v1, %v903_v17  ;;  %v1193_v17 = vsub.s32 5, %v4838_v15  ;;  %v2777_v15 = vld [vmem:[%s4775_s5 + $0x8] sm:$0xff] }
 0x28d   : > { %2596 = vmatpush1.bf16.msra.mxu1 %v3922_v4 }
 0x28e   : > { %2703 = vmatpush1.bf16.msra.mxu0 %v3925_v5  ;;  %2606 = vmatprep.subr.bf16.mxu1 %v3930_v6 }
 0x28f   : > { %2704 = vmatprep.subr.bf16.mxu0 %v3933_v7 }
 0x290   : > { %2598 = vmatmul.mubr.bf16.vlgmr.msra.gmra.mrb[4].mxu1 %v4863_v47 }
 0x291   : > { %2607 = vmatpush1.bf16.msra.mxu1 %v3928_v9  ;;  %2638 = vmatprep.mubr.bf16.mxu1 %v4368_v8 }
 0x292   : > { %2705 = vmatpush1.bf16.msra.mxu0 %v3931_v10  ;;  %2608 = vmatprep.subr.bf16.mxu1 %v3936_v11 }
 0x293   : > { %2706 = vmatprep.subr.bf16.mxu0 %v3939_v12  ;;  %v1182_v12 = vrot.slane %v1169_v1, %v899_v23 }
 0x295   : > { %2609 = vmatpush1.bf16.msra.mxu1 %v3934_v13 }
 0x296   : > { %2707 = vmatpush1.bf16.msra.mxu0 %v3937_v14  ;;  %2610 = vmatprep.subr.bf16.mxu1 %v3942_v18 }
 0x297   : > { %2708 = vmatprep.subr.bf16.mxu0 %v3945_v19 }
 0x299   : > { %2611 = vmatpush1.bf16.msra.mxu1 %v3940_v20 }
 0x29a   : > { %2709 = vmatpush1.bf16.msra.mxu0 %v3943_v21  ;;  %2612 = vmatprep.subr.bf16.mxu1 %v3948_v24 }
 0x29b   : > { %2710 = vmatprep.subr.bf16.mxu0 %v3951_v25  ;;  %v2776_v25 = vld [vmem:[%s4775_s5] sm:$0xff] }
 0x29d   : > { %2613 = vmatpush1.bf16.msra.mxu1 %v3946_v26 }
 0x29e   : > { %2711 = vmatpush1.bf16.msra.mxu0 %v3949_v27  ;;  %2614 = vmatprep.subr.bf16.mxu1 %v3954_v29  ;;  %v1190_v29 = vrot.slane %v1169_v1, %v907_v55  ;;  %v2778_v55 = vld [vmem:[%s4775_s5 + $0x10] sm:$0xff] }
 0x29f   : > { %2712 = vmatprep.subr.bf16.mxu0 %v3957_v30  ;;  %v1194_v30 = vrot.slane %v1169_v1, %v1193_v17 }
 0x2a1   : > { %2615 = vmatpush1.bf16.msra.mxu1 %v3952_v31 }
 0x2a2   : > { %2713 = vmatpush1.bf16.msra.mxu0 %v3955_v32  ;;  %2616 = vmatprep.subr.bf16.mxu1 %v3960_v33 }
 0x2a3   : > { %2714 = vmatprep.subr.bf16.mxu0 %v3963_v34 }
 0x2a5   : > { %2617 = vmatpush1.bf16.msra.mxu1 %v3958_v35 }
 0x2a6   : > { %2715 = vmatpush1.bf16.msra.mxu0 %v3961_v36  ;;  %2618 = vmatprep.subr.bf16.mxu1 %v3966_v37 }
 0x2a7   : > { %2716 = vmatprep.subr.bf16.mxu0 %v3969_v38 }
 0x2a9   : > { %2619 = vmatpush1.bf16.msra.mxu1 %v3964_v40 }
 0x2aa   : > { %2717 = vmatpush1.bf16.msra.mxu0 %v3967_v41  ;;  %2620 = vmatprep.subr.bf16.mxu1 %v3972_v43 }
 0x2ab   : > { %2718 = vmatprep.subr.bf16.mxu0 %v3975_v39 }
 0x2ad   : > { %2621 = vmatpush1.bf16.msra.mxu1 %v3970_v44 }
 0x2ae   : > { %2719 = vmatpush1.bf16.msra.mxu0 %v3973_v45 }
 0x2af   : > { %2729 = vmatprep.subr.bf16.mxu0 %v3978_v48 }
 0x2b0   : > { %2639 = vmatmul.mubr.bf16.vlgmr.msra.gmra.mrb[4].mxu1 %v4872_v28 }
 0x2b1   : > { %2721 = vmatmul.mubr.bf16.vlgmr.msra.gmra.mrb[4].mxu0 %v4863_v47  ;;  %v3991_v47 = vld [vmem:[#allocation11 + $0x700] ss:$24 sps:$4 sm:$0xff]  }
 0x2b2   : > { %2730 = vmatpush1.bf16.msra.mxu0 %v3976_v49  ;;  %2761 = vmatprep.mubr.bf16.mxu0 %v4368_v8  ;;  %v3994_v8 = vld [vmem:[#allocation11 + $0x730] ss:$24 sps:$4 sm:$0xff]  }
 0x2b3   : > { %2731 = vmatprep.subr.bf16.mxu0 %v3981_v50 }
 0x2b6   : > { %2732 = vmatpush1.bf16.msra.mxu0 %v3979_v51 }
 0x2b7   : > { %2733 = vmatprep.subr.bf16.mxu0 %v3984_v52 }
 0x2ba   : > { %2734 = vmatpush1.bf16.msra.mxu0 %v3982_v46 }
 0x2bb   : > { %2735 = vmatprep.subr.bf16.mxu0 %v3987_v53 }
 0x2be   : > { %2736 = vmatpush1.bf16.msra.mxu0 %v3985_v54 }
 0x2bf   : > { %2737 = vmatprep.subr.bf16.mxu0 %v3990_v42 }
 0x2c2   : > { %2738 = vmatpush1.bf16.msra.mxu0 %v3988_v56 }
 0x2c3   : > { %2739 = vmatprep.subr.bf16.mxu0 %v3993_v57 }
 0x2c6   : > { %2740 = vmatpush1.bf16.msra.mxu0 %v3991_v47 }
 0x2c7   : > { %2741 = vmatprep.subr.bf16.mxu0 %v3996_v58 }
 0x2ca   : > { %2742 = vmatpush1.bf16.msra.mxu0 %v3994_v8 }
 0x2cb   : > { %2743 = vmatprep.subr.bf16.mxu0 %v3999_v59 }
 0x2ce   : > { %2744 = vmatpush1.bf16.msra.mxu0 %v3997_v60 }
 0x2d1   : > { %2762 = vmatmul.mubr.bf16.vlgmr.msra.gmra.mrb[4].mxu0 %v4872_v28 }
 0x2e3   : > { %v2435_v61 = vpop.f32.mrb[0].mxu1 }
 0x2e4   : > { %v2437_v62 = vpop.f32.mrb[1].mxu1  ;;  %v2436_v4 = vadd.f32 %v2435_v61, %v1174_v2 }
 0x2e5   : > { %v2439_v63 = vpop.f32.mrb[2].mxu1  ;;  %v2438_v5 = vadd.f32 %v2437_v62, %v1178_v3 }
 0x2e6   : > { %v2440_v0 = vpop.f32.mrb[3].mxu1 }
 0x304   : > { %v2517_v6 = vpop.f32.mrb[0].mxu0 }
 0x305   : > { %v3381_v28 = vadd.f32 %v2517_v6, %v2436_v4  ;;  %v2519_v7 = vpop.f32.mrb[1].mxu0 }
 0x306   : > { %v3383_v9 = vadd.f32 %v2519_v7, %v2438_v5  ;;  %v2521_v10 = vpop.f32.mrb[2].mxu0 }
 0x307   : > { %2770 = vst [vmem:[%s4783_s3] sm:$0xff] %v3381_v28  ;;  %v2522_v11 = vpop.f32.mrb[3].mxu0 }
 0x308   : > { %2771 = vst [vmem:[%s4783_s3 + $0x8] sm:$0xff] %v3383_v9 }
 0x383   : > { %v2640_v16 = vpop.f32.mrb[4].mxu1 }
 0x384   : > { %v3384_v13 = vadd.f32 %v2640_v16, %v1182_v12  ;;  %v2642_v14 = vpop.f32.mrb[5].mxu1 }
 0x385   : > { %v3385_v18 = vadd.f32 %v2642_v14, %v1186_v22  ;;  %v2644_v19 = vpop.f32.mrb[6].mxu1 }
 0x386   : > { %2772 = vst [vmem:[%s4783_s3 + $0x10] sm:$0xff] %v3384_v13  ;;  %v2645_v20 = vpop.f32.mrb[7].mxu1 }
 0x387   : > { %2773 = vst [vmem:[%s4785_s2] sm:$0xff] %v3385_v18  ;;  %v2779_v21 = vmul.f32 0.5, %v3385_v18 }
 0x389   : > { %v2782_v24 = vmul.f32 1.442695, %v2779_v21 }
 0x38b   : > { %4012 = vpow2.f32 %v2782_v24 }
 0x395   : > { %v4013_v26 = vpop.eup %4012 }
 0x396   : > { %v2788_v23 = vmul.f32 %v4013_v26, %v2776_v25 }
 0x398   : > { %v2791_v27 = vadd.f32 %v3381_v28, %v2788_v23 }
 0x39a   : > { %2794 = vst [vmem:[%s4781_s25] sm:$0xff] %v2791_v27 }
 0x3a4   : > { %v2763_v31 = vpop.f32.mrb[4].mxu0 }
 0x3a5   : > { %v3386_v32 = vadd.f32 %v2763_v31, %v1190_v29  ;;  %v2765_v33 = vpop.f32.mrb[5].mxu0 }
 0x3a6   : > { %v3387_v34 = vadd.f32 %v2765_v33, %v1194_v30  ;;  %v2767_v35 = vpop.f32.mrb[6].mxu0 }
 0x3a7   : > { %2774 = vst [vmem:[%s4785_s2 + $0x8] sm:$0xff] %v3386_v32  ;;  %v2780_v36 = vmul.f32 0.5, %v3386_v32  ;;  %v2768_v37 = vpop.f32.mrb[7].mxu0 }
 0x3a8   : > { %2775 = vst [vmem:[%s4785_s2 + $0x10] sm:$0xff] %v3387_v34  ;;  %v2781_v38 = vmul.f32 0.5, %v3387_v34 }
 0x3a9   : > { %v2784_v40 = vmul.f32 1.442695, %v2780_v36 }
 0x3aa   : > { %v2786_v41 = vmul.f32 1.442695, %v2781_v38 }
 0x3ab   : > { %4014 = vpow2.f32 %v2784_v40 }
 0x3ac   : > { %4016 = vpow2.f32 %v2786_v41 }
 0x3b5   : > { %v4015_v43 = vpop.eup %4014 }
 0x3b6   : > { %v4017_v39 = vpop.eup %4016  ;;  %v2789_v44 = vmul.f32 %v4015_v43, %v2777_v15 }
 0x3b7   : > { %v2790_v45 = vmul.f32 %v4017_v39, %v2778_v55 }
 0x3b8   : > { %v2792_v48 = vadd.f32 %v3383_v9, %v2789_v44 }
 0x3b9   : > { %v2793_v49 = vadd.f32 %v3384_v13, %v2790_v45 }
 0x3ba   : > { %2795 = vst [vmem:[%s4781_s25 + $0x8] sm:$0xff] %v2792_v48 }
 0x3bb   : > { %2796 = vst [vmem:[%s4781_s25 + $0x10] sm:$0xff] %v2793_v49 }
 0x3bc PF: > { %s5123_s23 = sld [smem:[#allocation25_spill]]  ;;  %s2836_s4 = sshll.u32 %s4783_s3, 4  ;;  %s2837_s4 = int_to_ptr.vmem [resolvable:$true] %s2836_s4 }
 0x3bd   : > { %s5124_s14 = sld [smem:[#allocation37_spill]]  ;;  %s4924_s9 = scalar_lea.sflag [#allocation16], %s380_s27 }
 0x3be   : > { %s4136_s20 = scalar_lea.vmem %s2837_s4, 384  ;;  %p5126_p1 = scmp.ne.s32.totalorder %s5112_s26, 0 }
 0x3bf   : > { %p4137_p2 = scmp.ne.s32.totalorder %s2837_s4, %s4136_s20  ;;  %s4369_s0 = smov [#allocation15]  }
 0x3c0   : > { %s4140_s8 = sshll.u32 %s4369_s0, 4  ;;  %s4141_s8 = int_to_ptr.vmem [resolvable:$false] %s4140_s8 }
 0x3c1   : > { %p4138_p12 = pnand %p4137_p2, %p5126_p1  ;;  %s4142_s7 = scalar_lea.vmem %s4141_s8, 768 }
 0x3c2   : > { %s4913_s11 = smul.u32 384, %s5123_s23  ;;  %p4143_p4 = scmp.lt.s32.totalorder %s2837_s4, %s4141_s8 }
 0x3c3   : > { %s5125_s5 = smov %s5124_s14  ;;  %p4139_p3 = pneg %p4138_p12 }
 0x3c4   : > { %s4920_s17 = scalar_lea.hbm %s5124_s14, %s4913_s11  ;;  %p4144_p10 = scmp.lt.s32.totalorder %s4142_s7, %s4136_s20 }
 0x3c6   : > { %p4145_p8 = por %p4144_p10, %p4143_p4 }
 0x3c8   : > { %p4146_p13 = pnand %p4145_p8, %p4139_p3 }
 0x3ca   : > { %4149 = shalt.err (!%p4146_p13)
}
 0x3cb   : > { %s4150_s22 = scalar_lea.hbm %s4920_s17, 384  ;;  %s4154_s23 = scalar_lea.hbm %s5125_s5, 1152 }
 0x3cc   : > { %p4151_p11 = scmp.ne.s32.totalorder %s4920_s17, %s4150_s22  ;;  %p4155_p7 = scmp.lt.u32.totalorder %s4920_s17, %s5125_s5 }
 0x3cd   : > { %p4156_p0 = scmp.lt.u32.totalorder %s4154_s23, %s4150_s22  ;;  %p4158_p2 = scmp.lt.u32.totalorder %s4150_s22, %s4920_s17 }
 0x3ce   : > { %p4152_p5 = pnand %p4151_p11, %p5126_p1 }
 0x3cf   : > { %p4157_p6 = por %p4156_p0, %p4155_p7 }
 0x3d0   : > { %p4153_p9 = pneg %p4152_p5 }
 0x3d1   : > { %p4159_p12 = por %p4158_p2, %p4157_p6 }
 0x3d3   : > { %p4160_p3 = pnand %p4159_p12, %p4153_p9 }
 0x3d5   : > { %4163 = shalt.err (!%p4160_p3)
}
 0x3d6   : > { %3428 = dma.vmem_to_hbm [thread:$0]  (%p5126_p1), %s2837_s4, 384, %s4920_s17, %s4924_s9  }
 0x3d7   : > { %s5127_s0 = sld [smem:[#allocation36_spill]]  ;;  %s2822_s7 = sshll.u32 %s4781_s25, 4  ;;  %s4951_s7 = int_to_ptr.vmem [resolvable:$true] %s2822_s7 }
 0x3d8   : > { %s5128_s3 = sld [smem:[#allocation38_spill]]  ;;  %s2798_s28 = scalar_lea.sflag [#allocation8], %s4771_s24 }
 0x3d9   : > { %s4164_s16 = scalar_lea.vmem %s4951_s7, 384  ;;  %s4370_s4 = smov [#allocation14]  }
 0x3da   : > { %p4165_p4 = scmp.ne.s32.totalorder %s4951_s7, %s4164_s16  ;;  %s4168_s17 = sshll.u32 %s4370_s4, 4  ;;  %s4169_s17 = int_to_ptr.vmem [resolvable:$false] %s4168_s17 }
 0x3db   : > { %s4170_s25 = scalar_lea.vmem %s4169_s17, 768  ;;  %p4171_p13 = scmp.lt.s32.totalorder %s4951_s7, %s4169_s17 }
 0x3dc   : > { %p4166_p10 = pnand %p4165_p4, %p5126_p1  ;;  %p4172_p11 = scmp.lt.s32.totalorder %s4170_s25, %s4164_s16 }
 0x3dd   : > { %s4948_s8 = scalar_lea.hbm %s5127_s0, %s4913_s11 }
 0x3de   : > { %s4957_s23 = scalar_lea.hbm %s5128_s3, %s4913_s11  ;;  %p4167_p8 = pneg %p4166_p10 }
 0x3df   : > { %p4173_p5 = por %p4172_p11, %p4171_p13 }
 0x3e1   : > { %p4174_p9 = pnand %p4173_p5, %p4167_p8 }
 0x3e3   : > { %4177 = shalt.err (!%p4174_p9)
}
 0x3e4   : > { %s4178_s24 = scalar_lea.hbm %s4948_s8, 384  ;;  %s4182_s20 = scalar_lea.hbm %s5127_s0, 1152 }
 0x3e5   : > { %p4179_p7 = scmp.ne.s32.totalorder %s4948_s8, %s4178_s24  ;;  %p4183_p2 = scmp.lt.u32.totalorder %s4948_s8, %s5127_s0 }
 0x3e6   : > { %p4184_p12 = scmp.lt.u32.totalorder %s4182_s20, %s4178_s24  ;;  %p4186_p4 = scmp.lt.u32.totalorder %s4178_s24, %s4948_s8 }
 0x3e7   : > { %p4180_p0 = pnand %p4179_p7, %p5126_p1 }
 0x3e8   : > { %p4185_p3 = por %p4184_p12, %p4183_p2 }
 0x3e9   : > { %p4181_p6 = pneg %p4180_p0 }
 0x3ea   : > { %p4187_p10 = por %p4186_p4, %p4185_p3 }
 0x3ec   : > { %p4188_p8 = pnand %p4187_p10, %p4181_p6 }
 0x3ee   : > { %4191 = shalt.err (!%p4188_p8)
}
 0x3ef   : > { %3427 = dma.vmem_to_hbm [thread:$0]  (%p5126_p1), %s4951_s7, 384, %s4948_s8, %s2798_s28  }
 0x3f0   : > { %s2850_s16 = sshll.u32 %s4785_s2, 4  ;;  %s4371_s17 = smov [#allocation17]   ;;  %s2851_s16 = int_to_ptr.vmem [resolvable:$true] %s2850_s16 }
 0x3f1   : > { %s4192_s4 = scalar_lea.vmem %s2851_s16, 384  ;;  %s4196_s25 = sshll.u32 %s4371_s17, 4  ;;  %s4197_s25 = int_to_ptr.vmem [resolvable:$false] %s4196_s25 }
 0x3f2   : > { %p4193_p13 = scmp.ne.s32.totalorder %s2851_s16, %s4192_s4  ;;  %s4198_s24 = scalar_lea.vmem %s4197_s25, 768 }
 0x3f3   : > { %p4199_p9 = scmp.lt.s32.totalorder %s2851_s16, %s4197_s25  ;;  %p4200_p7 = scmp.lt.s32.totalorder %s4198_s24, %s4192_s4 }
 0x3f4   : > { %p4194_p11 = pnand %p4193_p13, %p5126_p1 }
 0x3f5   : > { %p4201_p0 = por %p4200_p7, %p4199_p9 }
 0x3f6   : > { %p4195_p5 = pneg %p4194_p11 }
 0x3f8   : > { %p4202_p6 = pnand %p4201_p0, %p4195_p5 }
 0x3fa   : > { %4205 = shalt.err (!%p4202_p6)
}
 0x3fb   : > { %s4206_s2 = scalar_lea.hbm %s4957_s23, 384  ;;  %s4210_s28 = scalar_lea.hbm %s5128_s3, 1152 }
 0x3fc   : > { %p4207_p2 = scmp.ne.s32.totalorder %s4957_s23, %s4206_s2  ;;  %p4211_p4 = scmp.lt.u32.totalorder %s4957_s23, %s5128_s3 }
 0x3fd   : > { %p4212_p10 = scmp.lt.u32.totalorder %s4210_s28, %s4206_s2  ;;  %p4214_p13 = scmp.lt.u32.totalorder %s4206_s2, %s4957_s23 }
 0x3fe   : > { %p4208_p12 = pnand %p4207_p2, %p5126_p1 }
 0x3ff   : > { %p4213_p8 = por %p4212_p10, %p4211_p4 }
 0x400   : > { %p4209_p3 = pneg %p4208_p12 }
 0x401   : > { %p4215_p11 = por %p4214_p13, %p4213_p8 }
 0x403   : > { %p4216_p5 = pnand %p4215_p11, %p4209_p3 }
 0x405   : > { %4219 = shalt.err (!%p4216_p5)
}
 0x406   : > { %3429 = dma.vmem_to_hbm [thread:$0]  (%p5126_p1), %s2851_s16, 384, %s4957_s23, %s4924_s9  }
 0x407 PF: > { %p3460_p9 = scmp.ge.s32.totalorder %s4354_s21, 2  ;;  %s2862_s20 = sand.u32 1, %s4302_s29  }
 0x408   : > { %p5129_p7 = scmp.ne.s32.totalorder %s5113_s1, 0  ;;  %s2863_s22 = scalar_lea.sflag [#allocation8], %s2862_s20 }
 0x40a   : > { %p3448_p0 = pnand %p3460_p9, %p5129_p7 }
 0x40c   : > { %4293 = dma.done.wait (!%p3448_p0), %s2863_s22, 384  }
 0x40d   : > { %4295 = vsyncadd (!%p3448_p0), %s2863_s22, 4294966912  ;;  %s5130_s27 = sadd.s32 4294967294, %s4354_s21  }
 0x40e   : > { %s2871_s4 = sand.u32 1, %s5130_s27  }
 0x40f   : > { %s2872_s17 = scalar_lea.sflag [#allocation16], %s2871_s4 }
 0x410   : > { %4297 = dma.done.wait (!%p3448_p0), %s2872_s17, 768  }
 0x411   : > { %4299 = vsyncadd (!%p3448_p0), %s2872_s17, 4294966528  ;;  %s36_s21 = sadd.s32 1, %s4354_s21   ;;  %s5132_s1 = sld [smem:[#allocation29_spill]] }
 0x412   : > { %p5007_p1 = scmp.ge.s32.totalorder %s36_s21, 8   ;;  %s5133_s9 = sld [smem:[#allocation24_spill]] }
 0x413   : > { %s5134_s16 = sld [smem:[#allocation30_spill]]  ;;  %s5135_s23 = sld [smem:[#allocation26_spill]] }
 0x414   : > { %s5136_s25 = sld [smem:[#allocation27_spill]]  ;;  %s5137_s20 = sld [smem:[#allocation28_spill]] }
 0x415   : > { %s5138_s29 = smov %s4306_s30  ;;  %s5139_s30 = smov %s4310_s10 }
 0x416   : > { %s5140_s10 = smov %s4681_s18  ;;  %s5141_s11 = smov %s4318_s12 }
 0x417   : > { %s5142_s12 = smov %s4322_s13  ;;  %s5143_s13 = smov %s5132_s1 }
 0x418   : > { %s5144_s14 = smov %s4330_s15  ;;  %s5145_s15 = smov %s5133_s9 }
 0x419   : > { %s5146_s17 = smov %s4346_s19  ;;  %s5147_s18 = smov %s5135_s23 }
 0x41a   : > { %s5148_s19 = smov %s5136_s25  ;;  %35 = sbr.rel (!%p5007_p1) target bundleno = 25 (0x19), region = 159 }
 0x421   :  { %2886 = vsyncpa [#allocation7], 1 }
 0x422   :  { %2888 = vsyncpa [#allocation7 + $0x1], 1 }
 0x423   :  { %2889 = vsyncpa [#allocation10], 1 }
 0x424   :  { %2891 = vsyncpa [#allocation10 + $0x1], 1 }
 0x425   :  { %2892 = vsyncpa [#allocation13], 1 }
 0x426   :  { %2894 = vsyncpa [#allocation13 + $0x1], 1 }
 0x427   :  { %2895 = vsyncpa [#allocation8], 1 }
 0x428   :  { %2897 = vsyncpa [#allocation8 + $0x1], 1 }
 0x429   :  { %2898 = vsyncpa [#allocation16], 1 }
 0x42a   :  { %2900 = vsyncpa [#allocation16 + $0x1], 1 }

</bundles_post_ra>
